<compile_context>
chip_gen: v7x
topology: tpu7x:2x2x1
jax: 0.10.0
libtpu: 0.0.40
codegen_flags: <defaults>
</compile_context>

<pallas_src>
import jax
import jax.numpy as jnp
from jax import lax
from jax.experimental import pallas as pl
from jax.experimental.pallas import tpu as pltpu


def _conv_bn_relu_kernel(x_ref, top_ref, bot_ref, w_ref, scale_ref, shift_ref,
                         o_ref):
    """One (batch, H-strip, Cout-tile) grid step.

    x_ref:     (Hs, W, Cin)     current input strip (NHWC, N squeezed), f32
    top_ref:   (1,  W, Cin)     row just above the strip (clamped at image top)
    bot_ref:   (1,  W, Cin)     row just below the strip (clamped at image bottom)
    w_ref:     (9, Cin, CoutT)  conv taps, tap index t = kw*3 + kh, bf16
    scale_ref: (1, CoutT)       folded BN scale (f32)
    shift_ref: (1, CoutT)       folded BN shift (f32)
    o_ref:     (Hs, W, CoutT)   output strip (CoutT lane-dense multiple of 128)
    """
    Hs, W, Cin = x_ref.shape
    CoutT = o_ref.shape[-1]
    R = Hs * W          # output rows handled by this step (matmul M dim)
    Re = R + 2 * W      # extended with the two halo rows

    h = pl.program_id(1)
    n_h = pl.num_programs(1)

    # Flatten rows to (R, Cin); W % 8 == 0 keeps this relayout-free.
    x2 = x_ref[...].reshape(R, Cin)
    zrow = jnp.zeros((W, Cin), x2.dtype)
    # 'same' zero padding along H: halo rows were clamped at the image border
    # by the index_map; select zeros there (jnp.where with a scalar predicate,
    # not a *0 multiply, so NaN/Inf in the clamped row cannot leak in).
    top2 = jnp.where(h > 0, top_ref[...].reshape(W, Cin), zrow)
    bot2 = jnp.where(h < n_h - 1, bot_ref[...].reshape(W, Cin), zrow)

    # Extended strip: halo row above + strip + halo row below.  Sublane concat
    # at offsets that are multiples of W (tile-aligned for W % 8 == 0).
    x_ext = jnp.concatenate([top2, x2, bot2], axis=0)              # (Re, Cin)

    # kw = -1 / +1 taps via sublane rolls (XLU slot, cheap) + edge-column masks
    # ('same' zero padding in W).  The mask only needs an (Re, 1) iota that is
    # broadcast into the select; power-of-two W avoids the modulo.
    iota = lax.broadcasted_iota(jnp.int32, (Re, 1), 0)
    col = (iota & (W - 1)) if (W & (W - 1)) == 0 else (iota % W)
    zext = jnp.zeros_like(x_ext)
    x_left = jnp.where(col > 0, pltpu.roll(x_ext, 1, axis=0), zext)          # x[., j-1, :]
    x_right = jnp.where(col < W - 1, pltpu.roll(x_ext, Re - 1, axis=0), zext)  # x[., j+1, :]

    # Cast once per shifted strip; the MXU consumes bf16 with f32 accumulation.
    # TODO(synk): on v6e/v7x cast to bf16 right after load (bf16 rolls/selects)
    # to halve the intermediate footprint; kept f32 above (v5e-friendly path).
    shifted = tuple(a.astype(jnp.bfloat16) for a in (x_left, x_ext, x_right))

    # kh taps are tile-aligned sublane slices of the shifted strips (offsets
    # are multiples of W).  Tap t = kw*3 + kh matches the weight layout.
    def tap(src, kh):
        return src[kh * W: kh * W + R]

    if Cin % 128 == 0:
        # Lane-aligned taps: fold everything into one K = 9*Cin MXU matmul.
        slab = jnp.concatenate(
            [tap(s, kh) for s in shifted for kh in range(3)], axis=-1)
        acc = jnp.dot(slab, w_ref[...].reshape(9 * Cin, CoutT),
                      preferred_element_type=jnp.float32)
    else:
        # Cin not lane-aligned: lane concats would relayout every step, so run
        # nine accumulating K = Cin matmuls straight off the shifted strips.
        acc = None
        for kw, src in enumerate(shifted):
            for kh in range(3):
                d = jnp.dot(tap(src, kh), w_ref[kw * 3 + kh],
                            preferred_element_type=jnp.float32)
                acc = d if acc is None else acc + d

    # Folded BatchNorm + ReLU epilogue in f32; lane-dense store.
    y = jnp.maximum(acc * scale_ref[...] + shift_ref[...], 0.0)
    o_ref[...] = y.reshape(Hs, W, CoutT).astype(o_ref.dtype)


def _round_up(x, m):
    return (x + m - 1) // m * m


# Tile-sizing knobs (per the perf review): aim for ~1-2K output rows per grid
# step, capped by a per-step live-VMEM estimate sized against v7x (64 MiB
# physical, 32 MiB default scoped).  vmem_limit_bytes below gives 2x headroom.
_ROWS_TARGET = 2048
_VMEM_BUDGET = 20 * 1024 * 1024
_VMEM_LIMIT = 40 * 1024 * 1024


def _vmem_estimate(hs, w, cin, cout_t):
    """Rough per-step live VMEM (double-buffered I/O + in-body intermediates)."""
    rows = hs * w
    re = rows + 2 * w
    cin_l = max(cin, 128)                       # channel axis is lane-padded in VMEM
    inp = 2 * re * cin_l * 4                    # f32 strip + halos, double-buffered
    wgt = 2 * 9 * max(cin, 16) * cout_t * 2     # bf16 weights, double-buffered
    out = 2 * rows * cout_t * 4                 # f32 output, double-buffered
    interm = 3 * re * cin_l * 4 + 3 * re * cin_l * 2 + 3 * rows * cout_t * 4
    return inp + wgt + out + interm


def _pick_h_strip(h_total, w_total, cin, cout_t):
    """Largest divisor of H with <= _ROWS_TARGET output rows and within VMEM."""
    best = 1
    for d in range(1, h_total + 1):
        if h_total % d:
            continue
        if d * w_total <= _ROWS_TARGET and \
                _vmem_estimate(d, w_total, cin, cout_t) <= _VMEM_BUDGET:
            best = d
    return best


def conv_bn_relu_nhwc(x_nhwc, w_oihw, gamma, beta, running_mean, running_var,
                      *, eps=1.001e-5, h_strip=None):
    """Conv2d(3x3, 'same', no bias) + folded BatchNorm2d + ReLU, NHWC in/out."""
    N, H, W, Cin = x_nhwc.shape
    Cout, Cin_w, KH, KW = w_oihw.shape
    assert (KH, KW) == (3, 3) and Cin_w == Cin

    # Fold inference-mode BatchNorm into a per-channel scale/shift.
    scale = gamma / jnp.sqrt(running_var + eps)
    shift = beta - running_mean * scale

    # Weights: (O, I, KH, KW) -> (KW, KH, I, O) -> (9, Cin, Cout_pad), bf16.
    # Tap index t = kw*3 + kh (kw-major, then kh) matches the kernel ordering.
    cout_p = _round_up(Cout, 128)
    w_t = jnp.transpose(w_oihw, (3, 2, 1, 0)).reshape(9, Cin, Cout)
    w_t = jnp.pad(w_t, ((0, 0), (0, 0), (0, cout_p - Cout))).astype(jnp.bfloat16)
    scale_p = jnp.pad(scale, (0, cout_p - Cout)).reshape(1, cout_p)
    shift_p = jnp.pad(shift, (0, cout_p - Cout)).reshape(1, cout_p)

    # Cout tiling: keep the whole padded Cout per step when the bf16 weight
    # slab is small (always true for nuclick-sized layers) -> weights fetched
    # once, widest lane-dense stores, fewest grid steps.  Otherwise 256-wide
    # tiles (matches the 256-wide MXU on v6e/v7x).
    if 9 * Cin * cout_p * 2 <= 4 * 1024 * 1024:
        cout_t = cout_p
    elif cout_p % 256 == 0:
        cout_t = 256
    else:
        cout_t = 128
    n_co = cout_p // cout_t

    hs = h_strip if h_strip is not None else _pick_h_strip(H, W, Cin, cout_t)
    assert H % hs == 0, "H-strip size must divide H"
    n_h = H // hs

    out_nhwc = pl.pallas_call(
        _conv_bn_relu_kernel,
        out_shape=jax.ShapeDtypeStruct((N, H, W, cout_p), x_nhwc.dtype),
        grid_spec=pltpu.PrefetchScalarGridSpec(
            num_scalar_prefetch=0,
            grid=(N, n_h, n_co),
            in_specs=[
                # Current H-strip of the input.
                pl.BlockSpec((None, hs, W, Cin),
                             lambda n, h, c: (n, h, 0, 0)),
                # 1-row halos above / below (clamped at the image border; the
                # kernel zeroes them there -> 'same' zero padding in H).
                # TODO(synk): merging the halos into the strip fetch (single
                # clamped pl.Element block) would cut DMA descriptors 3 -> 1.
                pl.BlockSpec((None, 1, W, Cin),
                             lambda n, h, c: (n, jnp.maximum(h * hs - 1, 0), 0, 0)),
                pl.BlockSpec((None, 1, W, Cin),
                             lambda n, h, c: (n, jnp.minimum((h + 1) * hs, H - 1), 0, 0)),
                # Conv taps / BN scale / BN shift, tiled over Cout (usually one tile).
                pl.BlockSpec((9, Cin, cout_t), lambda n, h, c: (0, 0, c)),
                pl.BlockSpec((1, cout_t), lambda n, h, c: (0, c)),
                pl.BlockSpec((1, cout_t), lambda n, h, c: (0, c)),
            ],
            out_specs=pl.BlockSpec((None, hs, W, cout_t),
                                   lambda n, h, c: (n, h, 0, c)),
        ),
        compiler_params=pltpu.CompilerParams(
            dimension_semantics=("parallel", "parallel", "parallel"),
            vmem_limit_bytes=_VMEM_LIMIT),
    )(x_nhwc, x_nhwc, x_nhwc, w_t, scale_p, shift_p)

    if cout_p != Cout:
        out_nhwc = out_nhwc[..., :Cout]
    return out_nhwc


def conv_bn_relu_pallas(x_nchw, w_oihw, gamma, beta, running_mean, running_var,
                        *, eps=1.001e-5, h_strip=None):
    """NCHW wrapper matching the PyTorch module convention.

    TODO(synk): in a multi-layer network keep activations NHWC end-to-end and
    call conv_bn_relu_nhwc directly; each transpose here is a full HBM pass.
    """
    x_nhwc = jnp.transpose(x_nchw, (0, 2, 3, 1))
    out_nhwc = conv_bn_relu_nhwc(x_nhwc, w_oihw, gamma, beta, running_mean,
                                 running_var, eps=eps, h_strip=h_strip)
    return jnp.transpose(out_nhwc, (0, 3, 1, 2))


def reference(x_nchw, w_oihw, scale, shift, *, matmul_dtype=jnp.float32):
    """Pure-JAX reference: conv (NCHW, 'same', no bias) + folded BN + ReLU."""
    y = lax.conv_general_dilated(
        x_nchw.astype(matmul_dtype), w_oihw.astype(matmul_dtype),
        window_strides=(1, 1), padding="SAME",
        dimension_numbers=("NCHW", "OIHW", "NCHW"),
        preferred_element_type=jnp.float32)
    y = y * scale[None, :, None, None] + shift[None, :, None, None]
    return jnp.maximum(y, 0.0)


if __name__ == "__main__":
    key = jax.random.PRNGKey(0)
    k_x, k_w, k_g, k_b, k_m, k_v = jax.random.split(key, 6)

    N, Cin, H, W, Cout = 2, 4, 16, 16, 32
    eps = 1.001e-5

    x = jax.random.normal(k_x, (N, Cin, H, W), jnp.float32)

    # Conv weight: xavier_uniform_ like the module __init__.
    fan_in, fan_out = Cin * 9, Cout * 9
    bound = (6.0 / (fan_in + fan_out)) ** 0.5
    w_oihw = jax.random.uniform(k_w, (Cout, Cin, 3, 3), jnp.float32,
                                -bound, bound)

    # Non-trivial inference-mode BatchNorm stats/affine (as if loaded from a
    # trained checkpoint) so the folded BN path is actually exercised.
    gamma = jax.random.uniform(k_g, (Cout,), jnp.float32, 0.5, 1.5)
    beta = 0.1 * jax.random.normal(k_b, (Cout,), jnp.float32)
    running_mean = 0.1 * jax.random.normal(k_m, (Cout,), jnp.float32)
    running_var = jax.random.uniform(k_v, (Cout,), jnp.float32, 0.5, 1.5)

    out = conv_bn_relu_pallas(x, w_oihw, gamma, beta, running_mean, running_var,
                              eps=eps)
    out = jax.block_until_ready(out)
    assert out.shape == (N, Cout, H, W)

    scale = gamma / jnp.sqrt(running_var + eps)
    shift = beta - running_mean * scale
    # Tight check against a reference with the same bf16 matmul inputs.
    ref_bf16 = jax.block_until_ready(
        reference(x, w_oihw, scale, shift, matmul_dtype=jnp.bfloat16))
    # Loose check against the pure-f32 module semantics (deliberate bf16-input
    # matmul precision trade-off; accumulation is f32 in both).
    ref_f32 = jax.block_until_ready(
        reference(x, w_oihw, scale, shift, matmul_dtype=jnp.float32))
    assert jnp.allclose(out, ref_bf16, atol=1e-3, rtol=1e-3), \
        "mismatch vs bf16 reference"
    assert jnp.allclose(out, ref_f32, atol=5e-2, rtol=5e-2), \
        "mismatch vs f32 reference"

    print("KERNEL_OK")
</pallas_src>

<mosaic_0001>
module attributes {stable_mosaic.version = 11 : i64} {
  func.func @_conv_bn_relu_kernel(%arg0: i32, %arg1: i32, %arg2: i32, %arg3: memref<1x16x16x4xf32, #tpu.memory_space<vmem>>, %arg4: memref<1x1x16x4xf32, #tpu.memory_space<vmem>>, %arg5: memref<1x1x16x4xf32, #tpu.memory_space<vmem>>, %arg6: memref<9x4x128xbf16, #tpu.memory_space<vmem>>, %arg7: memref<1x128xf32, #tpu.memory_space<vmem>>, %arg8: memref<1x128xf32, #tpu.memory_space<vmem>>, %arg9: memref<1x16x16x128xf32, #tpu.memory_space<vmem>>) attributes {dimension_semantics = [#tpu.dimension_semantics<parallel>, #tpu.dimension_semantics<parallel>, #tpu.dimension_semantics<parallel>], iteration_bounds = array<i64: 2, 1, 1>, scalar_prefetch = 0 : i64, scratch_operands = 0 : i64, tpu.core_type = #tpu.core_type<tc>, window_params = [{transform_indices = @transform_0, window_bounds = array<i64: 1, 16, 16, 4>}, {transform_indices = @transform_1, window_bounds = array<i64: 1, 1, 16, 4>}, {transform_indices = @transform_2, window_bounds = array<i64: 1, 1, 16, 4>}, {transform_indices = @transform_3, window_bounds = array<i64: 9, 4, 128>}, {transform_indices = @transform_4, window_bounds = array<i64: 1, 128>}, {transform_indices = @transform_5, window_bounds = array<i64: 1, 128>}, {transform_indices = @transform_6, window_bounds = array<i64: 1, 16, 16, 128>}]} {
    %c0 = arith.constant 0 : index
    %c0_0 = arith.constant 0 : index
    %c0_1 = arith.constant 0 : index
    %c0_2 = arith.constant 0 : index
    %0 = vector.load %arg3[%c0, %c0_0, %c0_1, %c0_2] : memref<1x16x16x4xf32, #tpu.memory_space<vmem>>, vector<1x16x16x4xf32>
    %1 = vector.shape_cast %0 : vector<1x16x16x4xf32> to vector<16x16x4xf32>
    %2 = vector.shape_cast %1 : vector<16x16x4xf32> to vector<256x4xf32>
    %cst = arith.constant 0.000000e+00 : f32
    %3 = vector.broadcast %cst : f32 to vector<16x4xf32>
    %c0_i32 = arith.constant 0 : i32
    %4 = arith.cmpi sgt, %arg1, %c0_i32 : i32
    %c0_3 = arith.constant 0 : index
    %c0_4 = arith.constant 0 : index
    %c0_5 = arith.constant 0 : index
    %c0_6 = arith.constant 0 : index
    %5 = vector.load %arg4[%c0_3, %c0_4, %c0_5, %c0_6] : memref<1x1x16x4xf32, #tpu.memory_space<vmem>>, vector<1x1x16x4xf32>
    %6 = vector.shape_cast %5 : vector<1x1x16x4xf32> to vector<1x16x4xf32>
    %7 = vector.shape_cast %6 : vector<1x16x4xf32> to vector<16x4xf32>
    %8 = arith.select %4, %7, %3 : vector<16x4xf32>
    %c0_i32_7 = arith.constant 0 : i32
    %9 = arith.cmpi slt, %arg1, %c0_i32_7 : i32
    %c0_8 = arith.constant 0 : index
    %c0_9 = arith.constant 0 : index
    %c0_10 = arith.constant 0 : index
    %c0_11 = arith.constant 0 : index
    %10 = vector.load %arg5[%c0_8, %c0_9, %c0_10, %c0_11] : memref<1x1x16x4xf32, #tpu.memory_space<vmem>>, vector<1x1x16x4xf32>
    %11 = vector.shape_cast %10 : vector<1x1x16x4xf32> to vector<1x16x4xf32>
    %12 = vector.shape_cast %11 : vector<1x16x4xf32> to vector<16x4xf32>
    %13 = arith.select %9, %12, %3 : vector<16x4xf32>
    %14 = tpu.concatenate %8, %2, %13 in 0 : vector<16x4xf32>, vector<256x4xf32>, vector<16x4xf32> -> vector<288x4xf32>
    %15 = tpu.iota {dimensions = array<i32: 0>} : vector<288x1xi32>
    %c15_i32 = arith.constant 15 : i32
    %16 = vector.broadcast %c15_i32 : i32 to vector<288x1xi32>
    %17 = arith.andi %15, %16 : vector<288x1xi32>
    %cst_12 = arith.constant 0.000000e+00 : f32
    %18 = vector.broadcast %cst_12 : f32 to vector<288x4xf32>
    %c0_i32_13 = arith.constant 0 : i32
    %19 = vector.broadcast %c0_i32_13 : i32 to vector<288x1xi32>
    %20 = arith.cmpi sgt, %17, %19 : vector<288x1xi32>
    %c1_i32 = arith.constant 1 : i32
    %21 = tpu.dynamic_rotate %14 by %c1_i32 dim 0 : vector<288x4xf32>, i32 -> vector<288x4xf32>
    %22 = vector.shape_cast %20 : vector<288x1xi1> to vector<288x1xi1>
    %23 = vector.broadcast %22 : vector<288x1xi1> to vector<288x4xi1>
    %24 = arith.select %23, %21, %18 : vector<288x4xi1>, vector<288x4xf32>
    %c15_i32_14 = arith.constant 15 : i32
    %25 = vector.broadcast %c15_i32_14 : i32 to vector<288x1xi32>
    %26 = arith.cmpi slt, %17, %25 : vector<288x1xi32>
    %c287_i32 = arith.constant 287 : i32
    %27 = tpu.dynamic_rotate %14 by %c287_i32 dim 0 : vector<288x4xf32>, i32 -> vector<288x4xf32>
    %28 = vector.shape_cast %26 : vector<288x1xi1> to vector<288x1xi1>
    %29 = vector.broadcast %28 : vector<288x1xi1> to vector<288x4xi1>
    %30 = arith.select %29, %27, %18 : vector<288x4xi1>, vector<288x4xf32>
    %31 = arith.truncf %24 : vector<288x4xf32> to vector<288x4xbf16>
    %32 = arith.truncf %14 : vector<288x4xf32> to vector<288x4xbf16>
    %33 = arith.truncf %30 : vector<288x4xf32> to vector<288x4xbf16>
    %34 = vector.extract_strided_slice %31 {offsets = [0, 0], sizes = [256, 4], strides = [1, 1]} : vector<288x4xbf16> to vector<256x4xbf16>
    %c0_15 = arith.constant 0 : index
    %c0_16 = arith.constant 0 : index
    %c0_17 = arith.constant 0 : index
    %35 = vector.load %arg6[%c0_15, %c0_16, %c0_17] : memref<9x4x128xbf16, #tpu.memory_space<vmem>>, vector<1x4x128xbf16>
    %36 = vector.shape_cast %35 : vector<1x4x128xbf16> to vector<4x128xbf16>
    %cst_18 = arith.constant dense<0.000000e+00> : vector<256x128xf32>
    %37 = tpu.matmul %34, %36, %cst_18 {dimension_numbers = #tpu.dot_dimension_numbers<[1], [0], [0], [1], [0, 0, 1, 1], [], []>} : vector<256x4xbf16>, vector<4x128xbf16>, vector<256x128xf32> -> vector<256x128xf32>
    %38 = vector.extract_strided_slice %31 {offsets = [16, 0], sizes = [256, 4], strides = [1, 1]} : vector<288x4xbf16> to vector<256x4xbf16>
    %c1 = arith.constant 1 : index
    %c0_19 = arith.constant 0 : index
    %c0_20 = arith.constant 0 : index
    %39 = vector.load %arg6[%c1, %c0_19, %c0_20] : memref<9x4x128xbf16, #tpu.memory_space<vmem>>, vector<1x4x128xbf16>
    %40 = vector.shape_cast %39 : vector<1x4x128xbf16> to vector<4x128xbf16>
    %cst_21 = arith.constant dense<0.000000e+00> : vector<256x128xf32>
    %41 = tpu.matmul %38, %40, %cst_21 {dimension_numbers = #tpu.dot_dimension_numbers<[1], [0], [0], [1], [0, 0, 1, 1], [], []>} : vector<256x4xbf16>, vector<4x128xbf16>, vector<256x128xf32> -> vector<256x128xf32>
    %42 = arith.addf %37, %41 : vector<256x128xf32>
    %43 = vector.extract_strided_slice %31 {offsets = [32, 0], sizes = [256, 4], strides = [1, 1]} : vector<288x4xbf16> to vector<256x4xbf16>
    %c2 = arith.constant 2 : index
    %c0_22 = arith.constant 0 : index
    %c0_23 = arith.constant 0 : index
    %44 = vector.load %arg6[%c2, %c0_22, %c0_23] : memref<9x4x128xbf16, #tpu.memory_space<vmem>>, vector<1x4x128xbf16>
    %45 = vector.shape_cast %44 : vector<1x4x128xbf16> to vector<4x128xbf16>
    %cst_24 = arith.constant dense<0.000000e+00> : vector<256x128xf32>
    %46 = tpu.matmul %43, %45, %cst_24 {dimension_numbers = #tpu.dot_dimension_numbers<[1], [0], [0], [1], [0, 0, 1, 1], [], []>} : vector<256x4xbf16>, vector<4x128xbf16>, vector<256x128xf32> -> vector<256x128xf32>
    %47 = arith.addf %42, %46 : vector<256x128xf32>
    %48 = vector.extract_strided_slice %32 {offsets = [0, 0], sizes = [256, 4], strides = [1, 1]} : vector<288x4xbf16> to vector<256x4xbf16>
    %c3 = arith.constant 3 : index
    %c0_25 = arith.constant 0 : index
    %c0_26 = arith.constant 0 : index
    %49 = vector.load %arg6[%c3, %c0_25, %c0_26] : memref<9x4x128xbf16, #tpu.memory_space<vmem>>, vector<1x4x128xbf16>
    %50 = vector.shape_cast %49 : vector<1x4x128xbf16> to vector<4x128xbf16>
    %cst_27 = arith.constant dense<0.000000e+00> : vector<256x128xf32>
    %51 = tpu.matmul %48, %50, %cst_27 {dimension_numbers = #tpu.dot_dimension_numbers<[1], [0], [0], [1], [0, 0, 1, 1], [], []>} : vector<256x4xbf16>, vector<4x128xbf16>, vector<256x128xf32> -> vector<256x128xf32>
    %52 = arith.addf %47, %51 : vector<256x128xf32>
    %53 = vector.extract_strided_slice %32 {offsets = [16, 0], sizes = [256, 4], strides = [1, 1]} : vector<288x4xbf16> to vector<256x4xbf16>
    %c4 = arith.constant 4 : index
    %c0_28 = arith.constant 0 : index
    %c0_29 = arith.constant 0 : index
    %54 = vector.load %arg6[%c4, %c0_28, %c0_29] : memref<9x4x128xbf16, #tpu.memory_space<vmem>>, vector<1x4x128xbf16>
    %55 = vector.shape_cast %54 : vector<1x4x128xbf16> to vector<4x128xbf16>
    %cst_30 = arith.constant dense<0.000000e+00> : vector<256x128xf32>
    %56 = tpu.matmul %53, %55, %cst_30 {dimension_numbers = #tpu.dot_dimension_numbers<[1], [0], [0], [1], [0, 0, 1, 1], [], []>} : vector<256x4xbf16>, vector<4x128xbf16>, vector<256x128xf32> -> vector<256x128xf32>
    %57 = arith.addf %52, %56 : vector<256x128xf32>
    %58 = vector.extract_strided_slice %32 {offsets = [32, 0], sizes = [256, 4], strides = [1, 1]} : vector<288x4xbf16> to vector<256x4xbf16>
    %c5 = arith.constant 5 : index
    %c0_31 = arith.constant 0 : index
    %c0_32 = arith.constant 0 : index
    %59 = vector.load %arg6[%c5, %c0_31, %c0_32] : memref<9x4x128xbf16, #tpu.memory_space<vmem>>, vector<1x4x128xbf16>
    %60 = vector.shape_cast %59 : vector<1x4x128xbf16> to vector<4x128xbf16>
    %cst_33 = arith.constant dense<0.000000e+00> : vector<256x128xf32>
    %61 = tpu.matmul %58, %60, %cst_33 {dimension_numbers = #tpu.dot_dimension_numbers<[1], [0], [0], [1], [0, 0, 1, 1], [], []>} : vector<256x4xbf16>, vector<4x128xbf16>, vector<256x128xf32> -> vector<256x128xf32>
    %62 = arith.addf %57, %61 : vector<256x128xf32>
    %63 = vector.extract_strided_slice %33 {offsets = [0, 0], sizes = [256, 4], strides = [1, 1]} : vector<288x4xbf16> to vector<256x4xbf16>
    %c6 = arith.constant 6 : index
    %c0_34 = arith.constant 0 : index
    %c0_35 = arith.constant 0 : index
    %64 = vector.load %arg6[%c6, %c0_34, %c0_35] : memref<9x4x128xbf16, #tpu.memory_space<vmem>>, vector<1x4x128xbf16>
    %65 = vector.shape_cast %64 : vector<1x4x128xbf16> to vector<4x128xbf16>
    %cst_36 = arith.constant dense<0.000000e+00> : vector<256x128xf32>
    %66 = tpu.matmul %63, %65, %cst_36 {dimension_numbers = #tpu.dot_dimension_numbers<[1], [0], [0], [1], [0, 0, 1, 1], [], []>} : vector<256x4xbf16>, vector<4x128xbf16>, vector<256x128xf32> -> vector<256x128xf32>
    %67 = arith.addf %62, %66 : vector<256x128xf32>
    %68 = vector.extract_strided_slice %33 {offsets = [16, 0], sizes = [256, 4], strides = [1, 1]} : vector<288x4xbf16> to vector<256x4xbf16>
    %c7 = arith.constant 7 : index
    %c0_37 = arith.constant 0 : index
    %c0_38 = arith.constant 0 : index
    %69 = vector.load %arg6[%c7, %c0_37, %c0_38] : memref<9x4x128xbf16, #tpu.memory_space<vmem>>, vector<1x4x128xbf16>
    %70 = vector.shape_cast %69 : vector<1x4x128xbf16> to vector<4x128xbf16>
    %cst_39 = arith.constant dense<0.000000e+00> : vector<256x128xf32>
    %71 = tpu.matmul %68, %70, %cst_39 {dimension_numbers = #tpu.dot_dimension_numbers<[1], [0], [0], [1], [0, 0, 1, 1], [], []>} : vector<256x4xbf16>, vector<4x128xbf16>, vector<256x128xf32> -> vector<256x128xf32>
    %72 = arith.addf %67, %71 : vector<256x128xf32>
    %73 = vector.extract_strided_slice %33 {offsets = [32, 0], sizes = [256, 4], strides = [1, 1]} : vector<288x4xbf16> to vector<256x4xbf16>
    %c8 = arith.constant 8 : index
    %c0_40 = arith.constant 0 : index
    %c0_41 = arith.constant 0 : index
    %74 = vector.load %arg6[%c8, %c0_40, %c0_41] : memref<9x4x128xbf16, #tpu.memory_space<vmem>>, vector<1x4x128xbf16>
    %75 = vector.shape_cast %74 : vector<1x4x128xbf16> to vector<4x128xbf16>
    %cst_42 = arith.constant dense<0.000000e+00> : vector<256x128xf32>
    %76 = tpu.matmul %73, %75, %cst_42 {dimension_numbers = #tpu.dot_dimension_numbers<[1], [0], [0], [1], [0, 0, 1, 1], [], []>} : vector<256x4xbf16>, vector<4x128xbf16>, vector<256x128xf32> -> vector<256x128xf32>
    %77 = arith.addf %72, %76 : vector<256x128xf32>
    %c0_43 = arith.constant 0 : index
    %c0_44 = arith.constant 0 : index
    %78 = vector.load %arg7[%c0_43, %c0_44] : memref<1x128xf32, #tpu.memory_space<vmem>>, vector<1x128xf32>
    %79 = vector.broadcast %78 : vector<1x128xf32> to vector<256x128xf32>
    %80 = arith.mulf %77, %79 : vector<256x128xf32>
    %c0_45 = arith.constant 0 : index
    %c0_46 = arith.constant 0 : index
    %81 = vector.load %arg8[%c0_45, %c0_46] : memref<1x128xf32, #tpu.memory_space<vmem>>, vector<1x128xf32>
    %82 = vector.broadcast %81 : vector<1x128xf32> to vector<256x128xf32>
    %83 = arith.addf %80, %82 : vector<256x128xf32>
    %cst_47 = arith.constant 0.000000e+00 : f32
    %84 = vector.broadcast %cst_47 : f32 to vector<256x128xf32>
    %85 = arith.maximumf %83, %84 : vector<256x128xf32>
    %86 = vector.shape_cast %85 : vector<256x128xf32> to vector<16x16x128xf32>
    %c0_48 = arith.constant 0 : index
    %c0_49 = arith.constant 0 : index
    %c0_50 = arith.constant 0 : index
    %c0_51 = arith.constant 0 : index
    %87 = vector.load %arg9[%c0_48, %c0_49, %c0_50, %c0_51] : memref<1x16x16x128xf32, #tpu.memory_space<vmem>>, vector<1x16x16x128xf32>
    %88 = vector.shape_cast %87 : vector<1x16x16x128xf32> to vector<16x16x128xf32>
    %89 = vector.shape_cast %86 : vector<16x16x128xf32> to vector<1x16x16x128xf32>
    tpu.vector_store %arg9[%c0_48, %c0_49, %c0_50, %c0_51], %89 {strides = array<i32>} : memref<1x16x16x128xf32, #tpu.memory_space<vmem>>, vector<1x16x16x128xf32>,
    return
  }
  func.func @transform_0(%arg0: i32, %arg1: i32, %arg2: i32) -> (i32, i32, i32, i32) {
    %c0_i32 = arith.constant 0 : i32
    %c0_i32_0 = arith.constant 0 : i32
    %c0_i32_1 = arith.constant 0 : i32
    return %arg0, %arg1, %c0_i32, %c0_i32_0 : i32, i32, i32, i32
  }
  func.func @transform_1(%arg0: i32, %arg1: i32, %arg2: i32) -> (i32, i32, i32, i32) {
    %c16_i32 = arith.constant 16 : i32
    %0 = arith.muli %arg1, %c16_i32 : i32
    %c1_i32 = arith.constant 1 : i32
    %1 = arith.subi %0, %c1_i32 : i32
    %c0_i32 = arith.constant 0 : i32
    %2 = arith.maxsi %1, %c0_i32 : i32
    %c0_i32_0 = arith.constant 0 : i32
    %c0_i32_1 = arith.constant 0 : i32
    %c0_i32_2 = arith.constant 0 : i32
    return %arg0, %2, %c0_i32_0, %c0_i32_1 : i32, i32, i32, i32
  }
  func.func @transform_2(%arg0: i32, %arg1: i32, %arg2: i32) -> (i32, i32, i32, i32) {
    %c1_i32 = arith.constant 1 : i32
    %0 = arith.addi %arg1, %c1_i32 : i32
    %c16_i32 = arith.constant 16 : i32
    %1 = arith.muli %0, %c16_i32 : i32
    %c15_i32 = arith.constant 15 : i32
    %2 = arith.minsi %1, %c15_i32 : i32
    %c0_i32 = arith.constant 0 : i32
    %c0_i32_0 = arith.constant 0 : i32
    %c0_i32_1 = arith.constant 0 : i32
    return %arg0, %2, %c0_i32, %c0_i32_0 : i32, i32, i32, i32
  }
  func.func @transform_3(%arg0: i32, %arg1: i32, %arg2: i32) -> (i32, i32, i32) {
    %c0_i32 = arith.constant 0 : i32
    %c0_i32_0 = arith.constant 0 : i32
    %c0_i32_1 = arith.constant 0 : i32
    return %c0_i32, %c0_i32_0, %arg2 : i32, i32, i32
  }
  func.func @transform_4(%arg0: i32, %arg1: i32, %arg2: i32) -> (i32, i32) {
    %c0_i32 = arith.constant 0 : i32
    %c0_i32_0 = arith.constant 0 : i32
    return %c0_i32, %arg2 : i32, i32
  }
  func.func @transform_5(%arg0: i32, %arg1: i32, %arg2: i32) -> (i32, i32) {
    %c0_i32 = arith.constant 0 : i32
    %c0_i32_0 = arith.constant 0 : i32
    return %c0_i32, %arg2 : i32, i32
  }
  func.func @transform_6(%arg0: i32, %arg1: i32, %arg2: i32) -> (i32, i32, i32, i32) {
    %c0_i32 = arith.constant 0 : i32
    %c0_i32_0 = arith.constant 0 : i32
    return %arg0, %arg1, %c0_i32, %arg2 : i32, i32, i32, i32
  }
}

</mosaic_0001>

<bundles_post_ra>
// kernel: tpu_custom_call.1
= control target key start
LH: loop header
LB: loop body
LE: loop exit
PB: predicated region body
PF: predicated region fallthrough
CT: control target
= control target key end

     0   :  { %11 = vsyncpa [#allocation3], 0  ;;  %s5581_s0 = inlined_call_operand.vmem [shape: f32[2,16,16,4], index: 0, kind: input, shape index: {}]   ;;  %s5582_s1 = inlined_call_operand.vmem [shape: f32[2,16,16,4], index: 1, kind: input, shape index: {}]   ;;  %s5583_s2 = inlined_call_operand.vmem [shape: f32[2,16,16,4], index: 2, kind: input, shape index: {}]   ;;  %s5584_s3 = inlined_call_operand.vmem [shape: bf16[9,4,128], index: 3, kind: input, shape index: {}]   ;;  %s5585_s4 = inlined_call_operand.vmem [shape: f32[1,128], index: 4, kind: input, shape index: {}]   ;;  %s5586_s5 = inlined_call_operand.vmem [shape: f32[1,128], index: 5, kind: input, shape index: {}]   ;;  %s5587_s6 = inlined_call_operand.hbm [shape: f32[2,16,16,128], index: 6, kind: output, shape index: {}]  }
   0x1   :  { %13 = vsyncpa [#allocation3 + $0x1], 0  ;;  %s4363_s21 = smov 0   ;;  %s4365_s1 = smov 0  }
   0x2   :  { %s4367_s22 = smov 0   ;;  %s4369_s2 = smov 0  }
   0x3   :  { %s4371_s23 = smov 0   ;;  %s4373_s24 = smov 0  }
   0x4 LB: > { %s3280_s25 = sadd.s32 4294967295, %s4321_s24   ;;  %s3281_s26 = sadd.s32 4294967294, %s4321_s24   ;;  %s4321_s24 = sphi %s4373_s24, %s19_s24   ;;  %s4317_s23 = sphi %s4371_s23, %s5714_s23   ;;  %s4313_s2 = sphi %s4369_s2, %s5713_s2   ;;  %s4309_s22 = sphi %s4367_s22, %s5712_s22   ;;  %s4305_s1 = sphi %s4365_s1, %s5711_s1   ;;  %s4301_s21 = sphi %s4363_s21, %s5710_s21  }
   0x5   : > { %s38_s27 = sadd.s32 1, %s4317_s23  ;;  %s227_s28 = sadd.s32 1, %s4309_s22 }
   0x6   : > { %p40_p0 = scmp.ge.s32.totalorder %s38_s27, 2  ;;  %p237_p1 = scmp.ne.s32.totalorder %s4309_s22, %s4305_s1 }
   0x7   : > { %p238_p2 = scmp.eq.s32.totalorder %s3280_s25, 1  ;;  %p243_p3 = scmp.ne.s32.totalorder %s4305_s1, %s4301_s21 }
   0x8   : > { %s5716_s27 = smov (%p40_p0, %s38_s27), 0  ;;  %p244_p5 = scmp.eq.s32.totalorder %s3281_s26, 1 }
   0x9   : > { %p4403_p4 = por %p238_p2, %p237_p1  ;;  %s220_s30 = ssub.s32 %s4317_s23, %s5716_s27 }
   0xa   : > { %p3287_p6 = scmp.ge.s32.totalorder %s4321_s24, 1  ;;  %p225_p7 = scmp.eq.s32.totalorder %s220_s30, 0 }
   0xb   : > { %p4410_p8 = por %p244_p5, %p243_p3  ;;  %p335_p9 = scmp.lt.s32.totalorder %s4321_s24, 3 }
   0xc   : > { %s4416_s8 = scalar_select %p225_p7, %s4309_s22, %s227_s28  }
   0xd   : > { %p336_p10 = pnand %p3287_p6, %p335_p9 }
   0xf   : > { %339 = sbr.rel (%p336_p10) target bundleno = 555 (0x22b), region = 44 }
  0x16   : > { %vm1124_vm0 = vcmask 1041408   ;;  %v4421_v0 = vld [vmem:[%s5584_s3 + $0x8] sm:$0x3]  ;;  %v3295_v1 = vld [vmem:[%s5584_s3 + $0x2] sm:$0x3]  ;;  %p407_p11 = scmp.lt.s32.totalorder %s4313_s2, 1  ;;  %v511_v2 = vlaneseq }
  0x17   : > { %5621 = vst [vmem:[#allocation5_spill] sm:$0xff] %v4421_v0  ;;  %4178 = vmatprep.subr.msk.bf16.mxu0 %vm1124_vm0, %v4421_v0  ;;  %v4431_v3 = vsel %vm1124_vm0, %v4421_v0, 0  ;;  %4174 = vmatprep.subr.msk.bf16.mxu1 %vm1124_vm0, %v3295_v1  ;;  %v1126_v4 = vsel %vm1124_vm0, %v3295_v1, 0  ;;  %v1072_v5 = vld [vmem:[%s5584_s3] sm:$0x3]  ;;  %vm1075_vm2 = vcmask 31744  }
  0x18   : > { %5622 = vst [vmem:[#allocation6_spill] sm:$0xff] %v4431_v3  ;;  %3747 = vmatpush3.bf16.msra.mxu0 %v4431_v3  ;;  %s408_s15 = scalar_select %p407_p11, %s4313_s2, 1  ;;  %v4440_v6 = vshrl.u32 %v511_v2, 7  ;;  %3611 = vmatpush3.bf16.msra.mxu1 %v1126_v4  ;;  %v3378_v7 = vld [vmem:[%s5584_s3 + $0xa] sm:$0x3]  ;;  %v5589_v9 = vmov 0.0  }
  0x19   : > { %4175 = vmatprep.subr.msk.bf16.mxu1 %vm1124_vm0, %v1072_v5  ;;  %4180 = vmatprep.subr.msk.bf16.mxu0 %vm1124_vm0, %v3378_v7  ;;  %v4455_v10 = vrot.slane %v5589_v9, 7  ;;  %v2110_v11 = vsel %vm1124_vm0, %v3378_v7, 0  ;;  %v4508_v35 = vld [vmem:[%s5584_s3 + $0xc] sm:$0x3]  ;;  %v1293_v46 = vsel %vm1124_vm0, %v1072_v5, 0  ;;  %s403_s16 = sand.u32 1, %s4305_s1  }
  0x1a   : > { %s3452_s18 = sshll.u32 %s408_s15, 8  ;;  %v514_v8 = vadd.s32 16, %v4440_v6  ;;  %vm873_vm1 = vcmp.lt.s32.totalorder %v4440_v6, 7  ;;  %vm656_vm3 = vcmp.lt.s32.totalorder %v4440_v6, 1  ;;  %v516_v16 = vadd.s32 32, %v4440_v6  ;;  %s3456_s28 = sshll.u32 %s4313_s2, 12 }
  0x1b   : > { %s4451_s25 = scalar_lea.vmem %s5581_s0, %s3452_s18  ;;  %v4476_v23 = vadd.s32 24, %v4440_v6  ;;  %v518_v30 = vadd.s32 48, %v4440_v6  ;;  %v520_v44 = vadd.s32 64, %v4440_v6  ;;  %v522_v56 = vadd.s32 80, %v4440_v6  ;;  %v4560_v57 = vld [vmem:[%s5584_s3 + $0x4] sm:$0x3]  ;;  %s5526_s11 = scalar_lea.hbm %s5587_s6, %s3456_s28 }
  0x1c   : > { %v4459_v12 = vld [vmem:[%s4451_s25] sm:$0xff]  ;;  %v464_v13 = vld [vmem:[%s4451_s25 + $0x8] sm:$0xff]  ;;  %v4463_v14 = vld [vmem:[%s4451_s25 + $0x10] sm:$0xff]  ;;  %v550_v15 = vand.u32 15, %v514_v8  ;;  %v552_v33 = vand.u32 15, %v516_v16  ;;  %v524_v8 = vadd.s32 96, %v4440_v6 }
  0x1d   : > { %5623 = vst [vmem:[#allocation7_spill] sm:$0xff] %v4459_v12  ;;  %v622_v17 = vrot.slane %v4459_v12, 7  ;;  %v623_v18 = vrot.slane %v464_v13, 7  ;;  %v5588_v19 = vrot.slane %v4459_v12, 1  ;;  %v840_v20 = vrot.slane %v464_v13, 1  ;;  %v4470_v21 = vld [vmem:[%s4451_s25 + $0x18] sm:$0xff] }
  0x1e   : > { %v4473_v22 = vpack.c.bf16 %v464_v13, %v4459_v12  ;;  %v624_v24 = vrot.slane %v4463_v14, 7  ;;  %v625_v25 = vrot.slane %v4470_v21, 7  ;;  %v5590_v27 = vrot.slane %v4463_v14, 1  ;;  %v4492_v29 = vld [vmem:[%s4451_s25 + $0x20] sm:$0xff]  ;;  %v4503_v34 = vld [vmem:[%s4451_s25 + $0x28] sm:$0xff]  ;;  %v4523_v40 = vld [vmem:[%s4451_s25 + $0x30] sm:$0xff] }
  0x1f   : > { %v4484_v26 = vsel %vm873_vm1, %v5588_v19, %v840_v20  ;;  %v4489_v28 = vpack.c.bf16 %v4470_v21, %v4463_v14  ;;  %vm586_vm4 = vcmp.gt.s32.totalorder %v550_v15, 0  ;;  %v689_v31 = vsel %vm656_vm3, %v622_v17, %v623_v18  ;;  %v4526_v41 = vld [vmem:[%s4451_s25 + $0x38] sm:$0xff]  ;;  %v4547_v52 = vld [vmem:[%s4451_s25 + $0x40] sm:$0xff]  ;;  %v4554_v55 = vld [vmem:[%s4451_s25 + $0x48] sm:$0xff]  ;;  %s5535_s2 = scalar_lea.sflag [#allocation3], %s403_s16  ;;  %s4325_s13 = smov [#allocation2]  }
  0x20   : > { %5624 = vst [vmem:[#allocation8_spill] sm:$0xff] %v4473_v22  ;;  %3748 = vmatprep.mubr.msk.bf16.mxu0 %vm1075_vm2, %v4473_v22  ;;  %v690_v32 = vsel %vm656_vm3, %v4455_v10, %v622_v17  ;;  %v4514_v36 = vsel %vm873_vm1, %v840_v20, %v5590_v27  ;;  %v687_v38 = vsel %vm656_vm3, %v624_v24, %v625_v25  ;;  %vm588_vm5 = vcmp.gt.s32.totalorder %v552_v33, 0  ;;  %v4572_v62 = vld [vmem:[%s4451_s25 + $0x50] sm:$0xff]  ;;  %v4580_v4 = vld [vmem:[%s4451_s25 + $0x58] sm:$0xff]  ;;  %v4599_v20 = vld [vmem:[%s4451_s25 + $0x60] sm:$0xff]  ;;  %s4247_s14 = sshll.u32 %s4325_s13, 4  ;;  %s4248_s14 = int_to_ptr.vmem [resolvable:$false] %s4247_s14 }
  0x21   : > { %5625 = vst [vmem:[#allocation9_spill] sm:$0xff] %v4489_v28  ;;  %3749 = vmatmul.mubr.msk.bf16.vlgmr.msra.gmra.mrb[0].mxu0 %vm1075_vm2, %v4489_v28  ;;  %v767_v37 = vsel %vm586_vm4, %v690_v32, 0.0  ;;  %v688_v39 = vsel %vm656_vm3, %v623_v18, %v624_v24  ;;  %v626_v43 = vrot.slane %v4492_v29, 7  ;;  %v627_v47 = vrot.slane %v4503_v34, 7  ;;  %v4802_v12 = vld [vmem:[%s4451_s25 + $0xe8] sm:$0xff]  ;;  %s4249_s15 = scalar_lea.vmem %s4248_s14, 8192 }
  0x22   : > { %v4528_v42 = vpack.c.bf16 %v689_v31, %v767_v37  ;;  %3781 = vmatpush3.bf16.msra.mxu0 %v2110_v11  ;;  %v769_v45 = vsel %vm588_vm5, %v688_v39, 0.0  ;;  %v4542_v49 = vpack.c.bf16 %v4503_v34, %v4492_v29  ;;  %v628_v50 = vrot.slane %v4523_v40, 7 }
  0x23   : > { %4181 = vmatprep.subr.msk.bf16.mxu0 %vm1124_vm0, %v4508_v35  ;;  %v4538_v48 = vpack.c.bf16 %v687_v38, %v769_v45  ;;  %v629_v51 = vrot.slane %v4526_v41, 7  ;;  %v4551_v53 = vpack.c.bf16 %v4526_v41, %v4523_v40  ;;  %v554_v54 = vand.u32 15, %v518_v30  ;;  %v4620_v38 = vld [vmem:[%s4451_s25 + $0x70] sm:$0xff]  ;;  %v4629_v45 = vld [vmem:[%s4451_s25 + $0x78] sm:$0xff] }
  0x24   : > { %5626 = vst [vmem:[#allocation10_spill] sm:$0xff] %v4528_v42  ;;  %3612 = vmatprep.mubr.msk.bf16.mxu1 %vm1075_vm2, %v4528_v42  ;;  %5628 = vst [vmem:[#allocation12_spill] sm:$0xff] %v4542_v49  ;;  %v551_v58 = vand.u32 15, %v4476_v23  ;;  %3752 = vmatprep.mubr.msk.bf16.mxu0 %vm1075_vm2, %v4542_v49  ;;  %v685_v59 = vsel %vm656_vm3, %v626_v43, %v627_v47  ;;  %v686_v60 = vsel %vm656_vm3, %v625_v25, %v626_v43  ;;  %v4602_v23 = vld [vmem:[%s4451_s25 + $0x68] sm:$0xff] }
  0x25   : > { %5627 = vst [vmem:[#allocation11_spill] sm:$0xff] %v4538_v48  ;;  %5629 = vst [vmem:[#allocation13_spill] sm:$0xff] %v4551_v53  ;;  %3613 = vmatmul.mubr.msk.bf16.vlgmr.msra.gmra.mrb[0].mxu1 %vm1075_vm2, %v4538_v48  ;;  %v556_v61 = vand.u32 15, %v520_v44  ;;  %vm590_vm6 = vcmp.gt.s32.totalorder %v554_v54, 0  ;;  %v683_v63 = vsel %vm656_vm3, %v628_v50, %v629_v51  ;;  %v684_v1 = vsel %vm656_vm3, %v627_v47, %v628_v50 }
  0x26   : > { %3645 = vmatpush3.bf16.msra.mxu1 %v1293_v46  ;;  %v630_v2 = vrot.slane %v4547_v52, 7  ;;  %v771_v5 = vsel %vm590_vm6, %v686_v60, 0.0  ;;  %v631_v7 = vrot.slane %v4554_v55, 7  ;;  %v4592_v15 = vpack.c.bf16 %v4554_v55, %v4547_v52 }
  0x27   : > { %vm592_vm7 = vcmp.gt.s32.totalorder %v556_v61, 0  ;;  %4176 = vmatprep.subr.msk.bf16.mxu1 %vm1124_vm0, %v4560_v57  ;;  %v4588_v11 = vpack.c.bf16 %v685_v59, %v771_v5  ;;  %v632_v16 = vrot.slane %v4572_v62, 7  ;;  %v633_v18 = vrot.slane %v4580_v4, 7  ;;  %v4646_v59 = vld [vmem:[%s4451_s25 + $0x80] sm:$0xff]  ;;  %v4723_v61 = vld [vmem:[%s4451_s25 + $0xa8] sm:$0xff] }
  0x28   : > { %v773_v13 = vsel %vm592_vm7, %v684_v1, 0.0  ;;  %vm4604_vm8 = vcmp.lt.s32.totalorder %v551_v58, 15  ;;  %v558_v25 = vand.u32 15, %v522_v56  ;;  %v682_v30 = vsel %vm656_vm3, %v629_v51, %v630_v2 }
  0x29   : > { %3753 = vmatmul.mubr.msk.bf16.gmra.mrb[4].mxu0 %vm1075_vm2, %v4551_v53  ;;  %5630 = vst [vmem:[#allocation14_spill] sm:$0xff] %v4588_v11  ;;  %v4595_v17 = vpack.c.bf16 %v683_v63, %v773_v13  ;;  %3616 = vmatprep.mubr.msk.bf16.mxu1 %vm1075_vm2, %v4588_v11  ;;  %v681_v32 = vsel %vm656_vm3, %v630_v2, %v631_v7  ;;  %v560_v33 = vand.u32 15, %v524_v8  ;;  %v634_v43 = vrot.slane %v4599_v20, 7  ;;  %v4653_v2 = vld [vmem:[%s4451_s25 + $0x88] sm:$0xff] }
  0x2a   : > { %3756 = vmatprep.mubr.msk.bf16.mxu0 %vm1075_vm2, %v4592_v15  ;;  %v680_v37 = vsel %vm656_vm3, %v631_v7, %v632_v16  ;;  %v4624_v39 = vpack.c.bf16 %v4580_v4, %v4572_v62  ;;  %vm594_vm9 = vcmp.gt.s32.totalorder %v558_v25, 0  ;;  %v635_v44 = vrot.slane %v4602_v23, 7 }
  0x2b   : > { %5631 = vst [vmem:[#allocation15_spill] sm:$0xff] %v4595_v17  ;;  %v775_v46 = vsel %vm594_vm9, %v682_v30, 0.0  ;;  %vm596_vm10 = vcmp.gt.s32.totalorder %v560_v33, 0  ;;  %v679_v47 = vsel %vm656_vm3, %v632_v16, %v633_v18  ;;  %v4637_v50 = vpack.c.bf16 %v4602_v23, %v4599_v20  ;;  %v4669_v16 = vld [vmem:[%s4451_s25 + $0x90] sm:$0xff] }
  0x2c   : > { %v4642_v54 = vpack.c.bf16 %v681_v32, %v775_v46  ;;  %v777_v56 = vsel %vm596_vm10, %v680_v37, 0.0  ;;  %v636_v58 = vrot.slane %v4620_v38, 7  ;;  %v637_v63 = vrot.slane %v4629_v45, 7  ;;  %v4678_v37 = vld [vmem:[%s4451_s25 + $0x98] sm:$0xff] }
  0x2d   : > { %3617 = vmatmul.mubr.msk.bf16.gmra.mrb[4].mxu1 %vm1075_vm2, %v4595_v17  ;;  %v526_v1 = vadd.s32 112, %v4440_v6  ;;  %v4659_v5 = vpack.c.bf16 %v679_v47, %v777_v56  ;;  %v4663_v7 = vpack.c.bf16 %v4629_v45, %v4620_v38  ;;  %v677_v8 = vsel %vm656_vm3, %v634_v43, %v635_v44 }
  0x2e   : > { %5634 = vst [vmem:[#allocation16_spill] sm:$0xff] %v4642_v54  ;;  %3620 = vmatprep.mubr.msk.bf16.mxu1 %vm1075_vm2, %v4642_v54  ;;  %v528_v13 = vadd.s32 128, %v4440_v6  ;;  %v678_v30 = vsel %vm656_vm3, %v633_v18, %v634_v43  ;;  %v530_v32 = vadd.s32 144, %v4440_v6  ;;  %v638_v33 = vrot.slane %v4646_v59, 7  ;;  %v4778_v54 = vld [vmem:[%s4451_s25 + $0xd8] sm:$0xff] }
  0x2f   : > { %5635 = vst [vmem:[#allocation17_spill] sm:$0xff] %v4659_v5  ;;  %v562_v25 = vand.u32 15, %v526_v1  ;;  %v676_v47 = vsel %vm656_vm3, %v635_v44, %v636_v58  ;;  %v639_v56 = vrot.slane %v4653_v2, 7  ;;  %v532_v19 = vadd.s32 160, %v4440_v6 }
  0x30   : > { %v564_v46 = vand.u32 15, %v528_v13  ;;  %v566_v1 = vand.u32 15, %v530_v32  ;;  %v674_v18 = vsel %vm656_vm3, %v637_v63, %v638_v33  ;;  %v640_v43 = vrot.slane %v4669_v16, 7 }
  0x31   : > { %3757 = vmatmul.mubr.msk.bf16.gmra.mrb[8].mxu0 %vm1075_vm2, %v4624_v39  ;;  %vm598_vm11 = vcmp.gt.s32.totalorder %v562_v25, 0  ;;  %v568_v13 = vand.u32 15, %v532_v19  ;;  %v641_v44 = vrot.slane %v4678_v37, 7  ;;  %v675_v19 = vsel %vm656_vm3, %v636_v58, %v637_v63 }
  0x32   : > { %3760 = vmatprep.mubr.msk.bf16.mxu0 %vm1075_vm2, %v4637_v50  ;;  %v779_v9 = vsel %vm598_vm11, %v678_v30, 0.0  ;;  %vm4687_vm12 = vcmp.gt.s32.totalorder %v564_v46, 0  ;;  %vm4698_vm13 = vcmp.gt.s32.totalorder %v566_v1, 0  ;;  %v4703_v46 = vld [vmem:[%s4451_s25 + $0xa0] sm:$0xff]  ;;  %v673_v25 = vsel %vm656_vm3, %v638_v33, %v639_v56  ;;  %v4727_v33 = vld [vmem:[%s4451_s25 + $0xb0] sm:$0xff] }
  0x33   : > { %v4696_v32 = vpack.c.bf16 %v677_v8, %v779_v9  ;;  %v781_v27 = vsel %vm4687_vm12, %v676_v47, 0.0  ;;  %v783_v9 = vsel %vm4698_vm13, %v674_v18, 0.0  ;;  %vm4716_vm14 = vcmp.gt.s32.totalorder %v568_v13, 0  ;;  %v4730_v47 = vld [vmem:[%s4451_s25 + $0xb8] sm:$0xff]  ;;  %v4740_v8 = vld [vmem:[%s4451_s25 + $0xc0] sm:$0xff] }
  0x34   : > { %v672_v58 = vsel %vm656_vm3, %v639_v56, %v640_v43  ;;  %v534_v63 = vadd.s32 176, %v4440_v6  ;;  %v671_v13 = vsel %vm656_vm3, %v640_v43, %v641_v44  ;;  %v642_v30 = vrot.slane %v4703_v46, 7 }
  0x35   : > { %3621 = vmatmul.mubr.msk.bf16.gmra.mrb[8].mxu1 %vm1075_vm2, %v4659_v5  ;;  %5638 = vst [vmem:[#allocation18_spill] sm:$0xff] %v4696_v32  ;;  %v536_v56 = vadd.s32 192, %v4440_v6  ;;  %v4742_v31 = vpack.c.bf16 %v675_v19, %v781_v27  ;;  %v4746_v60 = vpack.c.bf16 %v673_v25, %v783_v9  ;;  %v538_v51 = vadd.s32 208, %v4440_v6  ;;  %v4755_v27 = vld [vmem:[%s4451_s25 + $0xc8] sm:$0xff]  ;;  %v4805_v19 = vld [vmem:[%s4451_s25 + $0xf0] sm:$0xff] }
  0x36   : > { %3624 = vmatprep.mubr.msk.bf16.mxu1 %vm1075_vm2, %v4696_v32  ;;  %v570_v18 = vand.u32 15, %v534_v63  ;;  %v785_v43 = vsel %vm4716_vm14, %v672_v58, 0.0  ;;  %v643_v3 = vrot.slane %v4723_v61, 7  ;;  %v644_v22 = vrot.slane %v4727_v33, 7  ;;  %v4765_v58 = vld [vmem:[%s4451_s25 + $0xd0] sm:$0xff] }
  0x37   : > { %5643 = vst [vmem:[#allocation19_spill] sm:$0xff] %v4742_v31  ;;  %5644 = vst [vmem:[#allocation20_spill] sm:$0xff] %v4746_v60  ;;  %v645_v0 = vrot.slane %v4730_v47, 7  ;;  %v670_v25 = vsel %vm656_vm3, %v641_v44, %v642_v30  ;;  %v572_v9 = vand.u32 15, %v536_v56  ;;  %v646_v1 = vrot.slane %v4740_v8, 7 }
  0x38   : > { %vm4757_vm15 = vcmp.gt.s32.totalorder %v570_v18, 0  ;;  %v574_v5 = vand.u32 15, %v538_v51  ;;  %v4772_v18 = vpack.c.bf16 %v671_v13, %v785_v43  ;;  %v2356_v44 = vsel %vm1124_vm0, %v4508_v35, 0 }
  0x39   : > { %3761 = vmatmul.mubr.msk.bf16.gmra.mrb[12].mxu0 %vm1075_vm2, %v4663_v7  ;;  %v647_v56 = vrot.slane %v4755_v27, 7  ;;  %v540_v63 = vadd.s32 224, %v4440_v6  ;;  %v669_v51 = vsel %vm656_vm3, %v642_v30, %v643_v3  ;;  %v787_v13 = vsel %vm4757_vm15, %v670_v25, 0.0  ;;  %v4810_v25 = vld [vmem:[%s5584_s3 + $0xe] sm:$0x3] }
  0x3a   : > { %3782 = vmatprep.mubr.msk.bf16.mxu0 %vm1075_vm2, %v4489_v28  ;;  %v4782_v28 = vld [vmem:[%s4451_s25 + $0xe0] sm:$0xff]  ;;  %v667_v35 = vsel %vm656_vm3, %v644_v22, %v645_v0  ;;  %v648_v43 = vrot.slane %v4765_v58, 7  ;;  %vm4793_vm4 = vcmp.gt.s32.totalorder %v572_v9, 0  ;;  %5650 = vst [vmem:[#allocation22_spill] sm:$0xff] %v4810_v25  ;;  %vm4814_vm5 = vcmp.gt.s32.totalorder %v574_v5, 0 }
  0x3b   : > { %5647 = vst [vmem:[#allocation21_spill] sm:$0xff] %v4782_v28  ;;  %v576_v30 = vand.u32 15, %v540_v63  ;;  %v4823_v63 = vpack.c.bf16 %v669_v51, %v787_v13  ;;  %v544_v11 = vadd.s32 256, %v4440_v6  ;;  %v651_v42 = vrot.slane %v4802_v12, 7 }
  0x3c   : > { %v664_v5 = vsel %vm656_vm3, %v647_v56, %v648_v43  ;;  %v652_v51 = vrot.slane %v4805_v19, 7  ;;  %v665_v13 = vsel %vm656_vm3, %v646_v1, %v647_v56  ;;  %v5667_v9 = vrot.slane %v4503_v34, 1 }
  0x3d   : > { %3625 = vmatmul.mubr.msk.bf16.gmra.mrb[12].mxu1 %vm1075_vm2, %v4742_v31  ;;  %v668_v31 = vsel %vm656_vm3, %v643_v3, %v644_v22  ;;  %v649_v3 = vrot.slane %v4778_v54, 7  ;;  %v650_v22 = vrot.slane %v4782_v28, 7  ;;  %vm4825_vm6 = vcmp.gt.s32.totalorder %v576_v30, 0 }
  0x3e   : > { %3628 = vmatprep.mubr.msk.bf16.mxu1 %vm1075_vm2, %v4746_v60  ;;  %v666_v60 = vsel %vm656_vm3, %v645_v0, %v646_v1  ;;  %v542_v0 = vadd.s32 240, %v4440_v6  ;;  %v789_v48 = vsel %vm4793_vm4, %v668_v31, 0.0  ;;  %v580_v28 = vand.u32 15, %v544_v11 }
  0x3f   : > { %v791_v30 = vsel %vm4814_vm5, %v666_v60, 0.0  ;;  %v663_v31 = vsel %vm656_vm3, %v648_v43, %v649_v3  ;;  %v793_v32 = vsel %vm4825_vm6, %v664_v5, 0.0  ;;  %v548_v11 = vand.u32 15, %v4440_v6 }
  0x40   : > { %v661_v17 = vsel %vm656_vm3, %v650_v22, %v651_v42  ;;  %vm4868_vm9 = vcmp.gt.s32.totalorder %v580_v28, 0  ;;  %v4874_v5 = vpack.c.bf16 %v667_v35, %v789_v48  ;;  %v4878_v56 = vpack.c.bf16 %v663_v31, %v793_v32 }
  0x41   : > { %3783 = vmatmul.mubr.msk.bf16.vlgmr.msra.gmra.mrb[0].mxu0 %vm1075_vm2, %v4542_v49  ;;  %v4832_v49 = vld [vmem:[%s4451_s25 + $0xf8] sm:$0xff]  ;;  %v4882_v1 = vpack.c.bf16 %v4653_v2, %v4646_v59  ;;  %v4896_v48 = vpack.c.bf16 %v4723_v61, %v4703_v46  ;;  %vm4908_vm10 = vcmp.gt.s32.totalorder %v548_v11, 0  ;;  %v5662_v31 = vrot.slane %v4492_v29, 1  ;;  %s3288_s25 = sshll.u32 %s403_s16, 8 }
  0x42   : > { %3815 = vmatpush3.bf16.msra.mxu0 %v2356_v44  ;;  %3786 = vmatprep.mubr.msk.bf16.mxu0 %vm1075_vm2, %v4551_v53  ;;  %v578_v44 = vand.u32 15, %v542_v0  ;;  %v662_v53 = vsel %vm656_vm3, %v649_v3, %v650_v22  ;;  %v660_v3 = vsel %vm656_vm3, %v651_v42, %v652_v51  ;;  %v4892_v42 = vpack.c.bf16 %v4678_v37, %v4669_v16  ;;  %s5428_s26 = scalar_lea.vmem [#allocation2], %s3288_s25 }
  0x43   : > { %4182 = vmatprep.subr.msk.bf16.mxu0 %vm1124_vm0, %v4810_v25  ;;  %v5618_v25 = vrot.slane %v4832_v49, 7  ;;  %v797_v22 = vsel %vm4868_vm9, %v660_v3, 0.0  ;;  %v5663_v32 = vrot.slane %v4470_v21, 1  ;;  %v5668_v21 = vmov %v5667_v9  ;;  %s3113_s30 = sshll.u32 %s5428_s26, 4  ;;  %s5528_s30 = int_to_ptr.vmem [resolvable:$true] %s3113_s30 }
  0x44   : > { %vm4851_vm7 = vcmp.gt.s32.totalorder %v578_v44, 0  ;;  %v4876_v44 = vpack.c.bf16 %v665_v13, %v791_v30  ;;  %v5661_v13 = vsel %vm4604_vm8, %v4514_v36, 0.0  ;;  %v519_v36 = vadd.s32 56, %v4440_v6  ;;  %s4243_s12 = scalar_lea.vmem %s5528_s30, 4096  ;;  %p4250_p1 = scmp.lt.s32.totalorder %s5528_s30, %s4248_s14 }
  0x45   : > { %3629 = vmatmul.mubr.msk.bf16.gmra.mrb[16].mxu1 %vm1075_vm2, %v4772_v18  ;;  %v795_v43 = vsel %vm4851_vm7, %v662_v53, 0.0  ;;  %v659_v28 = vsel %vm656_vm3, %v652_v51, %v5618_v25  ;;  %v4900_v53 = vsel %vm1124_vm0, %v4560_v57, 0  ;;  %v4917_v30 = vpack.c.bf16 %v5661_v13, %v4484_v26  ;;  %p4244_p12 = scmp.ne.s32.totalorder %s5528_s30, %s4243_s12  ;;  %p4251_p2 = scmp.lt.s32.totalorder %s4249_s15, %s4243_s12 }
  0x46   : > { %3632 = vmatprep.mubr.msk.bf16.mxu1 %vm1075_vm2, %v4823_v63  ;;  %v4904_v35 = vpack.c.bf16 %v661_v17, %v795_v43  ;;  %v517_v57 = vadd.s32 40, %v4440_v6  ;;  %v903_v0 = vsel %vm873_vm1, %v5663_v32, %v5662_v31  ;;  %v5664_v11 = vmov %v5663_v32 }
  0x47   : > { %v5665_v17 = vrot.slane %v4463_v14, 1  ;;  %v4935_v26 = vpack.c.bf16 %v4730_v47, %v4727_v33  ;;  %v5666_v43 = vrot.slane %v4523_v40, 1  ;;  %v5669_v14 = vmov %v5662_v31  ;;  %p4245_p13 = pnand %p4244_p12, %p4403_p4  ;;  %p4252_p3 = por %p4251_p2, %p4250_p1 }
  0x48   : > { %v902_v13 = vsel %vm873_vm1, %v5669_v14, %v5668_v21  ;;  %v521_v31 = vadd.s32 72, %v4440_v6  ;;  %v553_v32 = vand.u32 15, %v517_v57  ;;  %v5671_v25 = vrot.slane %v4526_v41, 1 }
  0x49   : > { %3787 = vmatmul.mubr.msk.bf16.gmra.mrb[4].mxu0 %vm1075_vm2, %v4592_v15  ;;  %v904_v24 = vsel %vm873_vm1, %v5665_v17, %v5664_v11  ;;  %v901_v3 = vsel %vm873_vm1, %v5667_v9, %v5666_v43  ;;  %v555_v11 = vand.u32 15, %v519_v36  ;;  %v5670_v17 = vrot.slane %v4547_v52, 1  ;;  %p4246_p0 = pneg %p4245_p13 }
  0x4a   : > { %3790 = vmatprep.mubr.msk.bf16.mxu0 %vm1075_vm2, %v4624_v39  ;;  %v5672_v43 = vmov %v5671_v25  ;;  %v5673_v34 = vrot.slane %v4523_v40, 1  ;;  %v4964_v9 = vpack.c.bf16 %v659_v28, %v797_v22  ;;  %v557_v57 = vand.u32 15, %v521_v31 }
  0x4b   : > { %v899_v60 = vsel %vm873_vm1, %v5671_v25, %v5670_v17  ;;  %v523_v36 = vadd.s32 88, %v4440_v6  ;;  %v5674_v21 = vrot.slane %v4572_v62, 1  ;;  %v5675_v14 = vrot.slane %v4554_v55, 1  ;;  %p4253_p5 = pnand %p4252_p3, %p4246_p0 }
  0x4c   : > { %v900_v29 = vsel %vm873_vm1, %v5673_v34, %v5672_v43  ;;  %v765_v40 = vsel %vm4908_vm10, %v4455_v10, 0.0  ;;  %vm806_vm8 = vcmp.lt.s32.totalorder %v553_v32, 15  ;;  %vm808_vm11 = vcmp.lt.s32.totalorder %v555_v11, 15 }
  0x4d   : > { %3633 = vmatmul.mubr.msk.bf16.gmra.mrb[20].mxu1 %vm1075_vm2, %v4874_v5  ;;  %v897_v41 = vsel %vm873_vm1, %v5675_v14, %v5674_v21  ;;  %v5676_v25 = vmov %v5675_v14  ;;  %v5677_v28 = vmov %v5670_v17  ;;  %v4986_v31 = vpack.c.bf16 %v4755_v27, %v4740_v8 }
  0x4e   : > { %3636 = vmatprep.mubr.msk.bf16.mxu1 %vm1075_vm2, %v4876_v44  ;;  %v898_v22 = vsel %vm873_vm1, %v5677_v28, %v5676_v25  ;;  %v987_v17 = vsel %vm806_vm8, %v903_v0, 0.0  ;;  %v989_v43 = vsel %vm808_vm11, %v901_v3, 0.0  ;;  %vm810_vm12 = vcmp.lt.s32.totalorder %v557_v57, 15 }
  0x4f   : > { %v4990_v51 = vpack.c.bf16 %v987_v17, %v904_v24  ;;  %v4992_v32 = vpack.c.bf16 %v989_v43, %v902_v13  ;;  %v991_v55 = vsel %vm810_vm12, %v899_v60, 0.0  ;;  %v559_v11 = vand.u32 15, %v523_v36 }
  0x50   : > { %v4996_v52 = vpack.c.bf16 %v991_v55, %v900_v29  ;;  %v525_v34 = vadd.s32 104, %v4440_v6  ;;  %v5678_v0 = vrot.slane %v4599_v20, 1  ;;  %v5679_v3 = vrot.slane %v4580_v4, 1 }
  0x51   : > { %3791 = vmatmul.mubr.msk.bf16.gmra.mrb[8].mxu0 %vm1075_vm2, %v4637_v50  ;;  %v5681_v13 = vmov %v5674_v21  ;;  %vm812_vm13 = vcmp.lt.s32.totalorder %v559_v11, 15  ;;  %v527_v29 = vadd.s32 120, %v4440_v6  ;;  %v5682_v36 = vrot.slane %v4620_v38, 1 }
  0x52   : > { %3794 = vmatprep.mubr.msk.bf16.mxu0 %vm1075_vm2, %v4663_v7  ;;  %v895_v57 = vsel %vm873_vm1, %v5679_v3, %v5678_v0  ;;  %v5680_v24 = vmov %v5679_v3  ;;  %v5683_v21 = vrot.slane %v4602_v23, 1  ;;  %v5685_v28 = vmov %v5678_v0 }
  0x53   : > { %v896_v60 = vsel %vm873_vm1, %v5681_v13, %v5680_v24  ;;  %v993_v4 = vsel %vm812_vm13, %v897_v41, 0.0  ;;  %v561_v17 = vand.u32 15, %v525_v34  ;;  %v529_v43 = vadd.s32 136, %v4440_v6 }
  0x54   : > { %v893_v14 = vsel %vm873_vm1, %v5683_v21, %v5682_v36  ;;  %v5684_v25 = vmov %v5683_v21  ;;  %v855_v55 = vrot.slane %v4646_v59, 1  ;;  %v5026_v11 = vpack.c.bf16 %v993_v4, %v898_v22 }
  0x55   : > { %v894_v62 = vsel %vm873_vm1, %v5685_v28, %v5684_v25  ;;  %v563_v0 = vand.u32 15, %v527_v29  ;;  %v5686_v3 = vrot.slane %v4629_v45, 1  ;;  %v5687_v24 = vmov %v5682_v36  ;;  %3637 = vmatmul.mubr.msk.bf16.gmra.mrb[24].mxu1 %vm1075_vm2, %v4878_v56 }
  0x56   : > { %v531_v20 = vadd.s32 152, %v4440_v6  ;;  %vm814_vm14 = vcmp.lt.s32.totalorder %v561_v17, 15  ;;  %v565_v41 = vand.u32 15, %v529_v43  ;;  %v856_v22 = vrot.slane %v4653_v2, 1  ;;  %3640 = vmatprep.mubr.msk.bf16.mxu1 %vm1075_vm2, %v4904_v35 }
  0x57   : > { %v892_v23 = vsel %vm873_vm1, %v5687_v24, %v5686_v3  ;;  %v5688_v34 = vmov %v5686_v3  ;;  %v995_v38 = vsel %vm814_vm14, %v895_v57, 0.0  ;;  %vm816_vm15 = vcmp.lt.s32.totalorder %v563_v0, 15 }
  0x58   : > { %v891_v59 = vsel %vm873_vm1, %v5688_v34, %v855_v55  ;;  %v567_v13 = vand.u32 15, %v531_v20  ;;  %v857_v29 = vrot.slane %v4669_v16, 1  ;;  %v5045_v36 = vpack.c.bf16 %v995_v38, %v896_v60 }
  0x59   : > { %v997_v21 = vsel %vm816_vm15, %v893_v14, 0.0  ;;  %vm818_vm4 = vcmp.lt.s32.totalorder %v565_v41, 15  ;;  %v890_v45 = vsel %vm873_vm1, %v855_v55, %v856_v22  ;;  %3795 = vmatmul.mubr.msk.bf16.gmra.mrb[12].mxu0 %vm1075_vm2, %v4882_v1  ;;  %v1018_v16 = vpack.c.bf16 %v4455_v10, %v765_v40 }
  0x5a   : > { %v5051_v25 = vpack.c.bf16 %v997_v21, %v894_v62  ;;  %v999_v2 = vsel %vm818_vm4, %v891_v59, 0.0  ;;  %vm820_vm5 = vcmp.lt.s32.totalorder %v567_v13, 15  ;;  %v889_v57 = vsel %vm873_vm1, %v856_v22, %v857_v29  ;;  %3798 = vmatprep.mubr.msk.bf16.mxu0 %vm1075_vm2, %v4892_v42 }
  0x5b   : > { %v5058_v60 = vpack.c.bf16 %v999_v2, %v892_v23  ;;  %v1001_v14 = vsel %vm820_vm5, %v889_v57, 0.0  ;;  %v533_v28 = vadd.s32 168, %v4440_v6  ;;  %v858_v62 = vrot.slane %v4678_v37, 1 }
  0x5c   : > { %v5061_v4 = vpack.c.bf16 %v1001_v14, %v890_v45  ;;  %v859_v17 = vrot.slane %v4703_v46, 1  ;;  %v535_v43 = vadd.s32 184, %v4440_v6  ;;  %v860_v0 = vrot.slane %v4723_v61, 1 }
  0x5d   : > { %v569_v55 = vand.u32 15, %v533_v28  ;;  %v861_v3 = vrot.slane %v4727_v33, 1  ;;  %v537_v40 = vadd.s32 200, %v4440_v6  ;;  %v888_v23 = vsel %vm873_vm1, %v857_v29, %v858_v62  ;;  %3641 = vmatmul.mubr.msk.bf16.gmra.mrb[28].mxu1 %vm1075_vm2, %v4964_v9 }
  0x5e   : > { %v887_v24 = vsel %vm873_vm1, %v858_v62, %v859_v17  ;;  %v571_v20 = vand.u32 15, %v535_v43  ;;  %v862_v37 = vrot.slane %v4730_v47, 1  ;;  %v886_v61 = vsel %vm873_vm1, %v859_v17, %v860_v0  ;;  %3646 = vmatprep.mubr.msk.bf16.mxu1 %vm1075_vm2, %v1018_v16 }
  0x5f   : > { %vm822_vm6 = vcmp.lt.s32.totalorder %v569_v55, 15  ;;  %v885_v46 = vsel %vm873_vm1, %v860_v0, %v861_v3  ;;  %v573_v33 = vand.u32 15, %v537_v40  ;;  %v863_v34 = vrot.slane %v4740_v8, 1 }
  0x60   : > { %v1003_v41 = vsel %vm822_vm6, %v887_v24, 0.0  ;;  %vm824_vm7 = vcmp.lt.s32.totalorder %v571_v20, 15  ;;  %v884_v47 = vsel %vm873_vm1, %v861_v3, %v862_v37  ;;  %v539_v38 = vadd.s32 216, %v4440_v6  ;;  %v5112_v3 = vld [vmem:[%s5584_s3 + $0x6] sm:$0x3] }
  0x61   : > { %v5084_v59 = vpack.c.bf16 %v1003_v41, %v888_v23  ;;  %v1005_v22 = vsel %vm824_vm7, %v885_v46, 0.0  ;;  %vm826_vm9 = vcmp.lt.s32.totalorder %v573_v33, 15  ;;  %3799 = vmatmul.mubr.msk.bf16.gmra.mrb[16].mxu0 %vm1075_vm2, %v4896_v48  ;;  %v883_v29 = vsel %vm873_vm1, %v862_v37, %v863_v34  ;;  %v5690_v37 = vld [vmem:[#allocation10_spill] sm:$0xff]  ;;  %v5691_v41 = vld [vmem:[#allocation11_spill] sm:$0xff] }
  0x62   : > { %v5089_v13 = vpack.c.bf16 %v1005_v22, %v886_v61  ;;  %v864_v21 = vrot.slane %v4755_v27, 1  ;;  %v865_v8 = vrot.slane %v4765_v58, 1  ;;  %3802 = vmatprep.mubr.msk.bf16.mxu0 %vm1075_vm2, %v4935_v26  ;;  %v1007_v45 = vsel %vm826_vm9, %v883_v29, 0.0  ;;  %v5689_v27 = vld [vmem:[#allocation21_spill] sm:$0xff] }
  0x63   : > { %v575_v2 = vand.u32 15, %v539_v38  ;;  %v541_v57 = vadd.s32 232, %v4440_v6  ;;  %v866_v16 = vrot.slane %v4778_v54, 1  ;;  %v5099_v14 = vpack.c.bf16 %v1007_v45, %v884_v47 }
  0x64   : > { %v881_v28 = vsel %vm873_vm1, %v864_v21, %v865_v8  ;;  %v882_v62 = vsel %vm873_vm1, %v863_v34, %v864_v21  ;;  %v867_v17 = vrot.slane %v5689_v27, 1  ;;  %v543_v0 = vadd.s32 248, %v4440_v6 }
  0x65   : > { %vm828_vm10 = vcmp.lt.s32.totalorder %v575_v2, 15  ;;  %v577_v43 = vand.u32 15, %v541_v57  ;;  %v880_v55 = vsel %vm873_vm1, %v865_v8, %v866_v16  ;;  %v868_v23 = vrot.slane %v4802_v12, 1  ;;  %3647 = vmatmul.mubr.msk.bf16.vlgmr.msra.gmra.mrb[0].mxu1 %vm1075_vm2, %v5690_v37  ;;  %v5693_v2 = vld [vmem:[#allocation14_spill] sm:$0xff] }
  0x66   : > { %v1009_v40 = vsel %vm828_vm10, %v881_v28, 0.0  ;;  %v879_v24 = vsel %vm873_vm1, %v866_v16, %v867_v17  ;;  %v869_v20 = vrot.slane %v4805_v19, 1  ;;  %v5122_v46 = vpack.c.bf16 %v4778_v54, %v4765_v58  ;;  %3679 = vmatpush3.bf16.msra.mxu1 %v4900_v53  ;;  %3650 = vmatprep.mubr.msk.bf16.mxu1 %vm1075_vm2, %v5691_v41  ;;  %v5694_v16 = vld [vmem:[#allocation15_spill] sm:$0xff] }
  0x67   : > { %v5124_v61 = vpack.c.bf16 %v1009_v40, %v882_v62  ;;  %vm830_vm8 = vcmp.lt.s32.totalorder %v577_v43, 15  ;;  %v579_v33 = vand.u32 15, %v543_v0  ;;  %v878_v22 = vsel %vm873_vm1, %v867_v17, %v868_v23  ;;  %4177 = vmatprep.subr.msk.bf16.mxu1 %vm1124_vm0, %v5112_v3  ;;  %v5695_v28 = vld [vmem:[#allocation7_spill] sm:$0xff] }
  0x68   : > { %v1011_v34 = vsel %vm830_vm8, %v879_v24, 0.0  ;;  %v877_v47 = vsel %vm873_vm1, %v868_v23, %v869_v20  ;;  %v513_v38 = vadd.s32 8, %v4440_v6  ;;  %v5692_v29 = vmov 0.0   ;;  %v5698_v23 = vld [vmem:[#allocation17_spill] sm:$0xff] }
  0x69   : > { %v5136_v54 = vpack.c.bf16 %v1011_v34, %v880_v55  ;;  %vm832_vm11 = vcmp.lt.s32.totalorder %v579_v33, 15  ;;  %3803 = vmatmul.mubr.msk.bf16.gmra.mrb[20].mxu0 %vm1075_vm2, %v4986_v31  ;;  %v5145_v21 = vrot.slane %v5692_v29, 1  ;;  %v5149_v45 = vpack.c.bf16 %v4802_v12, %v5689_v27  ;;  %v5697_v55 = vld [vmem:[#allocation16_spill] sm:$0xff] }
  0x6a   : > { %v1013_v58 = vsel %vm832_vm11, %v877_v47, 0.0  ;;  %3806 = vmatprep.mubr.msk.bf16.mxu0 %vm1075_vm2, %v5122_v46  ;;  %v549_v8 = vand.u32 15, %v513_v38  ;;  %v5155_v57 = vpack.c.bf16 %v4832_v49, %v4805_v19  ;;  %v5696_v62 = vrot.slane %v5695_v28, 1  ;;  %v5699_v47 = vld [vmem:[#allocation18_spill] sm:$0xff]  ;;  %v5702_v29 = vld [vmem:[#allocation20_spill] sm:$0xff]  ;;  %v5703_v28 = vld [vmem:[#allocation5_spill] sm:$0xff] }
  0x6b   : > { %v5142_v53 = vpack.c.bf16 %v1013_v58, %v878_v22  ;;  %v545_v12 = vadd.s32 264, %v4440_v6  ;;  %v870_v43 = vrot.slane %v4832_v49, 1  ;;  %v4324_v34 = vmov 0.0|0.0   ;;  %v5700_v22 = vld [vmem:[#allocation19_spill] sm:$0xff]  ;;  %v5701_v38 = vld [vmem:[#allocation22_spill] sm:$0xff] }
  0x6c   : > { %vm802_vm12 = vcmp.lt.s32.totalorder %v549_v8, 15  ;;  %v907_v17 = vsel %vm873_vm1, %v5145_v21, %v5696_v62  ;;  %v3428_v58 = vld [vmem:[%s5584_s3 + $0x10] sm:$0x3]  ;;  %v1708_v8 = vsel %vm1124_vm0, %v5112_v3, 0 }
  0x6d   : > { %3651 = vmatmul.mubr.msk.bf16.gmra.mrb[4].mxu1 %vm1075_vm2, %v5693_v2  ;;  %v983_v19 = vsel %vm802_vm12, %v907_v17, 0.0  ;;  %v581_v27 = vand.u32 15, %v545_v12  ;;  %v875_v40 = vsel %vm873_vm1, %v870_v43, %v5145_v21  ;;  %v876_v24 = vsel %vm873_vm1, %v869_v20, %v870_v43 }
  0x6e   : > { %3654 = vmatprep.mubr.msk.bf16.mxu1 %vm1075_vm2, %v5694_v16  ;;  %v1054_v0 = vpack.c.bf16 %v983_v19, %v5145_v21  ;;  %v2557_v20 = vsel %vm1124_vm0, %v5701_v38, 0  ;;  %v2758_v3 = vsel %vm1124_vm0, %v3428_v58, 0 }
  0x6f   : > { %vm834_vm13 = vcmp.lt.s32.totalorder %v581_v27, 15 }
  0x70   : > { %v1015_v37 = vsel %vm834_vm13, %v875_v40, 0.0 }
  0x71   : > { %3807 = vmatmul.mubr.msk.bf16.gmra.mrb[24].mxu0 %vm1075_vm2, %v5149_v45  ;;  %v5180_v33 = vpack.c.bf16 %v1015_v37, %v876_v24 }
  0x72   : > { %3810 = vmatprep.mubr.msk.bf16.mxu0 %vm1075_vm2, %v5155_v57 }
  0x75   : > { %3655 = vmatmul.mubr.msk.bf16.gmra.mrb[8].mxu1 %vm1075_vm2, %v5697_v55 }
  0x76   : > { %3658 = vmatprep.mubr.msk.bf16.mxu1 %vm1075_vm2, %v5698_v23 }
  0x79   : > { %3811 = vmatmul.mubr.bf16.gmra.mrb[28].mxu0 %v4324_v34 }
  0x7a   : > { %3816 = vmatprep.mubr.msk.bf16.mxu0 %vm1075_vm2, %v1054_v0 }
  0x7d   : > { %3659 = vmatmul.mubr.msk.bf16.gmra.mrb[12].mxu1 %vm1075_vm2, %v5699_v47 }
  0x7e   : > { %3662 = vmatprep.mubr.msk.bf16.mxu1 %vm1075_vm2, %v5700_v22 }
  0x81   : > { %3817 = vmatmul.mubr.msk.bf16.vlgmr.msra.gmra.mrb[0].mxu0 %vm1075_vm2, %v4917_v30 }
  0x82   : > { %3849 = vmatpush3.bf16.msra.mxu0 %v2557_v20  ;;  %3820 = vmatprep.mubr.msk.bf16.mxu0 %vm1075_vm2, %v4990_v51 }
  0x83   : > { %4183 = vmatprep.subr.msk.bf16.mxu0 %vm1124_vm0, %v3428_v58 }
  0x85   : > { %3663 = vmatmul.mubr.msk.bf16.gmra.mrb[16].mxu1 %vm1075_vm2, %v5702_v29 }
  0x86   : > { %3666 = vmatprep.mubr.msk.bf16.mxu1 %vm1075_vm2, %v4772_v18 }
  0x89   : > { %3821 = vmatmul.mubr.msk.bf16.gmra.mrb[4].mxu0 %vm1075_vm2, %v4992_v32 }
  0x8a   : > { %3824 = vmatprep.mubr.msk.bf16.mxu0 %vm1075_vm2, %v4996_v52 }
  0x8d   : > { %3667 = vmatmul.mubr.msk.bf16.gmra.mrb[20].mxu1 %vm1075_vm2, %v4823_v63 }
  0x8e   : > { %3670 = vmatprep.mubr.msk.bf16.mxu1 %vm1075_vm2, %v4874_v5 }
  0x91   : > { %3825 = vmatmul.mubr.msk.bf16.gmra.mrb[8].mxu0 %vm1075_vm2, %v5026_v11 }
  0x92   : > { %3828 = vmatprep.mubr.msk.bf16.mxu0 %vm1075_vm2, %v5045_v36 }
  0x95   : > { %3671 = vmatmul.mubr.msk.bf16.gmra.mrb[24].mxu1 %vm1075_vm2, %v4876_v44 }
  0x96   : > { %3674 = vmatprep.mubr.msk.bf16.mxu1 %vm1075_vm2, %v4878_v56 }
  0x99   : > { %3829 = vmatmul.mubr.msk.bf16.gmra.mrb[12].mxu0 %vm1075_vm2, %v5051_v25 }
  0x9a   : > { %3832 = vmatprep.mubr.msk.bf16.mxu0 %vm1075_vm2, %v5058_v60 }
  0x9d   : > { %3675 = vmatmul.mubr.msk.bf16.gmra.mrb[28].mxu1 %vm1075_vm2, %v4904_v35 }
  0x9e   : > { %3680 = vmatprep.mubr.msk.bf16.mxu1 %vm1075_vm2, %v5691_v41  ;;  %v5709_v41 = vld [vmem:[#allocation13_spill] sm:$0xff] }
  0xa1   : > { %3833 = vmatmul.mubr.msk.bf16.gmra.mrb[16].mxu0 %vm1075_vm2, %v5061_v4 }
  0xa2   : > { %3836 = vmatprep.mubr.msk.bf16.mxu0 %vm1075_vm2, %v5084_v59 }
  0xa5   : > { %3681 = vmatmul.mubr.msk.bf16.vlgmr.msra.gmra.mrb[0].mxu1 %vm1075_vm2, %v5693_v2 }
  0xa6   : > { %3713 = vmatpush3.bf16.msra.mxu1 %v1708_v8  ;;  %3684 = vmatprep.mubr.msk.bf16.mxu1 %vm1075_vm2, %v5694_v16 }
  0xa7   : > { %4179 = vmatprep.subr.msk.bf16.mxu1 %vm1124_vm0, %v5703_v28 }
  0xa9   : > { %3837 = vmatmul.mubr.msk.bf16.gmra.mrb[20].mxu0 %vm1075_vm2, %v5089_v13 }
  0xaa   : > { %3840 = vmatprep.mubr.msk.bf16.mxu0 %vm1075_vm2, %v5099_v14 }
  0xad   : > { %3685 = vmatmul.mubr.msk.bf16.gmra.mrb[4].mxu1 %vm1075_vm2, %v5697_v55 }
  0xae   : > { %3688 = vmatprep.mubr.msk.bf16.mxu1 %vm1075_vm2, %v5698_v23 }
  0xb1   : > { %3841 = vmatmul.mubr.msk.bf16.gmra.mrb[24].mxu0 %vm1075_vm2, %v5124_v61 }
  0xb2   : > { %3844 = vmatprep.mubr.msk.bf16.mxu0 %vm1075_vm2, %v5136_v54 }
  0xb5   : > { %3689 = vmatmul.mubr.msk.bf16.gmra.mrb[8].mxu1 %vm1075_vm2, %v5699_v47 }
  0xb6   : > { %3692 = vmatprep.mubr.msk.bf16.mxu1 %vm1075_vm2, %v5700_v22 }
  0xb9   : > { %3845 = vmatmul.mubr.msk.bf16.gmra.mrb[28].mxu0 %vm1075_vm2, %v5142_v53 }
  0xba   : > { %3850 = vmatprep.mubr.msk.bf16.mxu0 %vm1075_vm2, %v4917_v30 }
  0xbd   : > { %3693 = vmatmul.mubr.msk.bf16.gmra.mrb[12].mxu1 %vm1075_vm2, %v5702_v29 }
  0xbe   : > { %3696 = vmatprep.mubr.msk.bf16.mxu1 %vm1075_vm2, %v4772_v18  ;;  %v546_v18 = vadd.s32 272, %v4440_v6 }
  0xc0   : > { %v582_v30 = vand.u32 15, %v546_v18 }
  0xc1   : > { %3851 = vmatmul.mubr.msk.bf16.vlgmr.msra.gmra.mrb[0].mxu0 %vm1075_vm2, %v4990_v51 }
  0xc2   : > { %3883 = vmatpush3.bf16.msra.mxu0 %v2758_v3  ;;  %3854 = vmatprep.mubr.msk.bf16.mxu0 %vm1075_vm2, %v4992_v32  ;;  %vm618_vm0 = vcmp.gt.s32.totalorder %v582_v30, 0 }
  0xc5   : > { %3697 = vmatmul.mubr.msk.bf16.gmra.mrb[16].mxu1 %vm1075_vm2, %v4823_v63  ;;  %v5704_v63 = vrot.slane %v4832_v49, 7  ;;  %v5705_v49 = vld [vmem:[#allocation8_spill] sm:$0xff] }
  0xc6   : > { %3700 = vmatprep.mubr.msk.bf16.mxu1 %vm1075_vm2, %v4874_v5 }
  0xc7   : > { %v658_v5 = vsel %vm656_vm3, %v5704_v63, %v4455_v10 }
  0xc9   : > { %3855 = vmatmul.mubr.msk.bf16.gmra.mrb[4].mxu0 %vm1075_vm2, %v4996_v52 }
  0xca   : > { %3858 = vmatprep.mubr.msk.bf16.mxu0 %vm1075_vm2, %v5026_v11 }
  0xcd   : > { %3701 = vmatmul.mubr.msk.bf16.gmra.mrb[20].mxu1 %vm1075_vm2, %v4876_v44 }
  0xce   : > { %3704 = vmatprep.mubr.msk.bf16.mxu1 %vm1075_vm2, %v4878_v56  ;;  %v799_v56 = vsel %vm618_vm0, %v658_v5, 0.0 }
  0xcf   : > { %v1035_v44 = vpack.c.bf16 %v4455_v10, %v799_v56  ;;  %v5708_v10 = vld [vmem:[#allocation12_spill] sm:$0xff] }
  0xd1   : > { %3859 = vmatmul.mubr.msk.bf16.gmra.mrb[8].mxu0 %vm1075_vm2, %v5045_v36 }
  0xd2   : > { %3862 = vmatprep.mubr.msk.bf16.mxu0 %vm1075_vm2, %v5051_v25 }
  0xd5   : > { %3705 = vmatmul.mubr.msk.bf16.gmra.mrb[24].mxu1 %vm1075_vm2, %v4904_v35  ;;  %v5706_v35 = vld [vmem:[#allocation6_spill] sm:$0xff] }
  0xd6   : > { %3708 = vmatprep.mubr.msk.bf16.mxu1 %vm1075_vm2, %v4964_v9  ;;  %v5707_v9 = vld [vmem:[#allocation9_spill] sm:$0xff] }
  0xd9   : > { %3863 = vmatmul.mubr.msk.bf16.gmra.mrb[12].mxu0 %vm1075_vm2, %v5058_v60 }
  0xda   : > { %3866 = vmatprep.mubr.msk.bf16.mxu0 %vm1075_vm2, %v5061_v4 }
  0xdd   : > { %3709 = vmatmul.mubr.msk.bf16.gmra.mrb[28].mxu1 %vm1075_vm2, %v1035_v44 }
  0xde   : > { %3714 = vmatprep.mubr.bf16.mxu1 %v4324_v34 }
  0xe1   : > { %3867 = vmatmul.mubr.msk.bf16.gmra.mrb[16].mxu0 %vm1075_vm2, %v5084_v59 }
  0xe2   : > { %3870 = vmatprep.mubr.msk.bf16.mxu0 %vm1075_vm2, %v5089_v13 }
  0xe5   : > { %3715 = vmatmul.mubr.msk.bf16.vlgmr.msra.gmra.mrb[0].mxu1 %vm1075_vm2, %v5705_v49 }
  0xe6   : > { %3917 = vmatpush3.bf16.msra.mxu1 %v5706_v35  ;;  %3718 = vmatprep.mubr.msk.bf16.mxu1 %vm1075_vm2, %v5707_v9 }
  0xe9   : > { %3871 = vmatmul.mubr.msk.bf16.gmra.mrb[20].mxu0 %vm1075_vm2, %v5099_v14 }
  0xea   : > { %3874 = vmatprep.mubr.msk.bf16.mxu0 %vm1075_vm2, %v5124_v61 }
  0xed   : > { %3719 = vmatmul.mubr.msk.bf16.gmra.mrb[4].mxu1 %vm1075_vm2, %v5708_v10 }
  0xee   : > { %3722 = vmatprep.mubr.msk.bf16.mxu1 %vm1075_vm2, %v5709_v41 }
  0xf1   : > { %3875 = vmatmul.mubr.msk.bf16.gmra.mrb[24].mxu0 %vm1075_vm2, %v5136_v54 }
  0xf2   : > { %3878 = vmatprep.mubr.msk.bf16.mxu0 %vm1075_vm2, %v5142_v53 }
  0xf5   : > { %3723 = vmatmul.mubr.msk.bf16.gmra.mrb[8].mxu1 %vm1075_vm2, %v4592_v15  ;;  %v547_v15 = vadd.s32 280, %v4440_v6 }
  0xf6   : > { %3726 = vmatprep.mubr.msk.bf16.mxu1 %vm1075_vm2, %v4624_v39 }
  0xf7   : > { %v583_v39 = vand.u32 15, %v547_v15 }
  0xf9   : > { %3879 = vmatmul.mubr.msk.bf16.gmra.mrb[28].mxu0 %vm1075_vm2, %v5180_v33  ;;  %vm836_vm1 = vcmp.lt.s32.totalorder %v583_v39, 15 }
  0xfa   : > { %3884 = vmatprep.mubr.msk.bf16.mxu0 %vm1075_vm2, %v4990_v51  ;;  %v1017_v6 = vsel %vm836_vm1, %v5145_v21, 0.0 }
  0xfd   : > { %3727 = vmatmul.mubr.msk.bf16.gmra.mrb[12].mxu1 %vm1075_vm2, %v4637_v50  ;;  %v1071_v50 = vpack.c.bf16 %v1017_v6, %v5145_v21 }
  0xfe   : > { %3730 = vmatprep.mubr.msk.bf16.mxu1 %vm1075_vm2, %v4663_v7 }
 0x101   : > { %3885 = vmatmul.mubr.msk.bf16.vlgmr.msra.gmra.mrb[0].mxu0 %vm1075_vm2, %v4992_v32 }
 0x102   : > { %3888 = vmatprep.mubr.msk.bf16.mxu0 %vm1075_vm2, %v4996_v52 }
 0x105   : > { %3731 = vmatmul.mubr.msk.bf16.gmra.mrb[16].mxu1 %vm1075_vm2, %v4882_v1 }
 0x106   : > { %3734 = vmatprep.mubr.msk.bf16.mxu1 %vm1075_vm2, %v4892_v42 }
 0x109   : > { %3889 = vmatmul.mubr.msk.bf16.gmra.mrb[4].mxu0 %vm1075_vm2, %v5026_v11 }
 0x10a   : > { %3892 = vmatprep.mubr.msk.bf16.mxu0 %vm1075_vm2, %v5045_v36 }
 0x10d   : > { %3735 = vmatmul.mubr.msk.bf16.gmra.mrb[20].mxu1 %vm1075_vm2, %v4896_v48 }
 0x10e   : > { %3738 = vmatprep.mubr.msk.bf16.mxu1 %vm1075_vm2, %v4935_v26 }
 0x111   : > { %3893 = vmatmul.mubr.msk.bf16.gmra.mrb[8].mxu0 %vm1075_vm2, %v5051_v25 }
 0x112   : > { %3896 = vmatprep.mubr.msk.bf16.mxu0 %vm1075_vm2, %v5058_v60 }
 0x115   : > { %3739 = vmatmul.mubr.msk.bf16.gmra.mrb[24].mxu1 %vm1075_vm2, %v4986_v31 }
 0x116   : > { %3742 = vmatprep.mubr.msk.bf16.mxu1 %vm1075_vm2, %v5122_v46 }
 0x119   : > { %3897 = vmatmul.mubr.msk.bf16.gmra.mrb[12].mxu0 %vm1075_vm2, %v5061_v4 }
 0x11a   : > { %3900 = vmatprep.mubr.msk.bf16.mxu0 %vm1075_vm2, %v5084_v59 }
 0x11d   : > { %3743 = vmatmul.mubr.msk.bf16.gmra.mrb[28].mxu1 %vm1075_vm2, %v5149_v45 }
 0x11e   : > { %3764 = vmatprep.mubr.msk.bf16.mxu1 %vm1075_vm2, %v4882_v1 }
 0x121   : > { %3901 = vmatmul.mubr.msk.bf16.gmra.mrb[16].mxu0 %vm1075_vm2, %v5089_v13 }
 0x122   : > { %3904 = vmatprep.mubr.msk.bf16.mxu0 %vm1075_vm2, %v5099_v14 }
 0x125   : > { %3765 = vmatmul.mubr.msk.bf16.vlgmr.msra.gmra.mrb[16].mxu1 %vm1075_vm2, %v4892_v42 }
 0x126   : > { %3768 = vmatprep.mubr.msk.bf16.mxu1 %vm1075_vm2, %v4896_v48 }
 0x129   : > { %3905 = vmatmul.mubr.msk.bf16.gmra.mrb[20].mxu0 %vm1075_vm2, %v5124_v61 }
 0x12a   : > { %3908 = vmatprep.mubr.msk.bf16.mxu0 %vm1075_vm2, %v5136_v54 }
 0x12d   : > { %3769 = vmatmul.mubr.msk.bf16.gmra.mrb[20].mxu1 %vm1075_vm2, %v4935_v26 }
 0x12e   : > { %3772 = vmatprep.mubr.msk.bf16.mxu1 %vm1075_vm2, %v4986_v31 }
 0x131   : > { %3909 = vmatmul.mubr.msk.bf16.gmra.mrb[24].mxu0 %vm1075_vm2, %v5142_v53  ;;  %v5416_v53 = vld [vmem:[%s5586_s5] ss:$0 sm:$0xff] }
 0x132   : > { %3912 = vmatprep.mubr.msk.bf16.mxu0 %vm1075_vm2, %v5180_v33 }
 0x135   : > { %3773 = vmatmul.mubr.msk.bf16.gmra.mrb[24].mxu1 %vm1075_vm2, %v5122_v46  ;;  %v5411_v46 = vld [vmem:[%s5585_s4] ss:$0 sm:$0xff] }
 0x136   : > { %3776 = vmatprep.mubr.msk.bf16.mxu1 %vm1075_vm2, %v5149_v45 }
 0x139   : > { %3913 = vmatmul.mubr.msk.bf16.gmra.mrb[28].mxu0 %vm1075_vm2, %v1071_v50 }
 0x13d   : > { %3777 = vmatmul.mubr.msk.bf16.gmra.mrb[28].mxu1 %vm1075_vm2, %v5155_v57 }
 0x1b8   : > { %v3716_v7 = vpop.f32.mrb[0].mxu1 }
 0x1b9   : > { %v1744_v1 = vpop.f32.mrb[1].mxu1 }
 0x1ba   : > { %v3717_v42 = vpop.f32.mrb[2].mxu1 }
 0x1bb   : > { %v1747_v48 = vpop.f32.mrb[3].mxu1 }
 0x1c0   : > { %v3720_v26 = vpop.f32.mrb[4].mxu1 }
 0x1c1   : > { %v1760_v31 = vpop.f32.mrb[5].mxu1 }
 0x1c2   : > { %v3721_v51 = vpop.f32.mrb[6].mxu1 }
 0x1c3   : > { %v1763_v32 = vpop.f32.mrb[7].mxu1 }
 0x1c8   : > { %v3724_v52 = vpop.f32.mrb[8].mxu1 }
 0x1c9   : > { %v1776_v11 = vpop.f32.mrb[9].mxu1 }
 0x1ca   : > { %v5395_v36 = vpop.f32.mrb[10].mxu1 }
 0x1cb   : > { %v5397_v25 = vpop.f32.mrb[11].mxu1 }
 0x1d0   : > { %v5399_v60 = vpop.f32.mrb[12].mxu1 }
 0x1d1   : > { %v5401_v4 = vpop.f32.mrb[13].mxu1 }
 0x1d2   : > { %v5403_v59 = vpop.f32.mrb[14].mxu1 }
 0x1d3   : > { %v5405_v13 = vpop.f32.mrb[15].mxu1 }
 0x1d4   : > { %v3886_v14 = vpop.f32.mrb[0].mxu0 }
 0x1d5   : > { %v3918_v61 = vadd.f32 %v3886_v14, %v3716_v7  ;;  %v2794_v54 = vpop.f32.mrb[1].mxu0 }
 0x1d6   : > { %v3919_v21 = vadd.f32 %v2794_v54, %v1744_v1  ;;  %v3887_v45 = vpop.f32.mrb[2].mxu0 }
 0x1d7   : > { %v2962_v2 = vmul.f32 %v3918_v61, %v5411_v46  ;;  %v3920_v57 = vadd.f32 %v3887_v45, %v3717_v42  ;;  %v2797_v16 = vpop.f32.mrb[3].mxu0 }
 0x1d8   : > { %v2960_v62 = vmul.f32 %v3919_v21, %v5411_v46  ;;  %v3921_v17 = vadd.f32 %v2797_v16, %v1747_v48 }
 0x1d9   : > { %v3001_v12 = vadd.f32 %v5416_v53, %v2962_v2  ;;  %v2963_v19 = vmul.f32 %v3920_v57, %v5411_v46 }
 0x1da   : > { %v2999_v27 = vadd.f32 %v5416_v53, %v2960_v62  ;;  %v2961_v43 = vmul.f32 %v3921_v17, %v5411_v46 }
 0x1db   : > { %v3033_v55 = vmax.f32 %v3001_v12, 0.0  ;;  %v3002_v0 = vadd.f32 %v5416_v53, %v2963_v19 }
 0x1dc   : > { %v3031_v40 = vmax.f32 %v2999_v27, 0.0  ;;  %v3000_v24 = vadd.f32 %v5416_v53, %v2961_v43  ;;  %v3890_v23 = vpop.f32.mrb[4].mxu0 }
 0x1dd   : > { %3065 = vst [vmem:[%s5428_s26 + $0x10] sm:$0xff] %v3033_v55  ;;  %v3034_v37 = vmax.f32 %v3002_v0, 0.0  ;;  %v3922_v33 = vadd.f32 %v3890_v23, %v3720_v26  ;;  %v2810_v34 = vpop.f32.mrb[5].mxu0 }
 0x1de   : > { %3063 = vst [vmem:[%s5428_s26] sm:$0xff] %v3031_v40  ;;  %v3032_v47 = vmax.f32 %v3000_v24, 0.0  ;;  %v3923_v22 = vadd.f32 %v2810_v34, %v1760_v31  ;;  %v3891_v38 = vpop.f32.mrb[6].mxu0 }
 0x1df   : > { %3066 = vst [vmem:[%s5428_s26 + $0x18] sm:$0xff] %v3034_v37  ;;  %v2966_v20 = vmul.f32 %v3922_v33, %v5411_v46  ;;  %v3924_v58 = vadd.f32 %v3891_v38, %v3721_v51  ;;  %v2813_v29 = vpop.f32.mrb[7].mxu0 }
 0x1e0   : > { %3064 = vst [vmem:[%s5428_s26 + $0x8] sm:$0xff] %v3032_v47  ;;  %v2964_v8 = vmul.f32 %v3923_v22, %v5411_v46  ;;  %v3925_v28 = vadd.f32 %v2813_v29, %v1763_v32 }
 0x1e1   : > { %v3005_v3 = vadd.f32 %v5416_v53, %v2966_v20  ;;  %v2967_v18 = vmul.f32 %v3924_v58, %v5411_v46 }
 0x1e2   : > { %v3003_v30 = vadd.f32 %v5416_v53, %v2964_v8  ;;  %v2965_v63 = vmul.f32 %v3925_v28, %v5411_v46 }
 0x1e3   : > { %v3037_v5 = vmax.f32 %v3005_v3, 0.0  ;;  %v3006_v56 = vadd.f32 %v5416_v53, %v2967_v18 }
 0x1e4   : > { %v3035_v44 = vmax.f32 %v3003_v30, 0.0  ;;  %v3004_v49 = vadd.f32 %v5416_v53, %v2965_v63  ;;  %v3894_v35 = vpop.f32.mrb[8].mxu0 }
 0x1e5   : > { %3069 = vst [vmem:[%s5428_s26 + $0x30] sm:$0xff] %v3037_v5  ;;  %v3038_v9 = vmax.f32 %v3006_v56, 0.0  ;;  %v3926_v10 = vadd.f32 %v3894_v35, %v3724_v52  ;;  %v2826_v41 = vpop.f32.mrb[9].mxu0 }
 0x1e6   : > { %3067 = vst [vmem:[%s5428_s26 + $0x20] sm:$0xff] %v3035_v44  ;;  %v3036_v15 = vmax.f32 %v3004_v49, 0.0  ;;  %v3927_v39 = vadd.f32 %v2826_v41, %v1776_v11  ;;  %v3895_v6 = vpop.f32.mrb[10].mxu0 }
 0x1e7   : > { %3070 = vst [vmem:[%s5428_s26 + $0x38] sm:$0xff] %v3038_v9  ;;  %v2970_v50 = vmul.f32 %v3926_v10, %v5411_v46  ;;  %v3928_v7 = vadd.f32 %v3895_v6, %v5395_v36  ;;  %v2829_v1 = vpop.f32.mrb[11].mxu0 }
 0x1e8   : > { %3068 = vst [vmem:[%s5428_s26 + $0x28] sm:$0xff] %v3036_v15  ;;  %v2968_v42 = vmul.f32 %v3927_v39, %v5411_v46  ;;  %v3929_v48 = vadd.f32 %v2829_v1, %v5397_v25 }
 0x1e9   : > { %v3009_v26 = vadd.f32 %v5416_v53, %v2970_v50  ;;  %v2971_v31 = vmul.f32 %v3928_v7, %v5411_v46 }
 0x1ea   : > { %v3007_v51 = vadd.f32 %v5416_v53, %v2968_v42  ;;  %v2969_v32 = vmul.f32 %v3929_v48, %v5411_v46 }
 0x1eb   : > { %v3041_v52 = vmax.f32 %v3009_v26, 0.0  ;;  %v3010_v11 = vadd.f32 %v5416_v53, %v2971_v31 }
 0x1ec   : > { %v3039_v36 = vmax.f32 %v3007_v51, 0.0  ;;  %v3008_v14 = vadd.f32 %v5416_v53, %v2969_v32  ;;  %v3898_v61 = vpop.f32.mrb[12].mxu0 }
 0x1ed   : > { %3073 = vst [vmem:[%s5428_s26 + $0x50] sm:$0xff] %v3041_v52  ;;  %v3042_v54 = vmax.f32 %v3010_v11, 0.0  ;;  %v3930_v25 = vadd.f32 %v3898_v61, %v5399_v60  ;;  %v2842_v21 = vpop.f32.mrb[13].mxu0 }
 0x1ee   : > { %3071 = vst [vmem:[%s5428_s26 + $0x40] sm:$0xff] %v3039_v36  ;;  %v3040_v45 = vmax.f32 %v3008_v14, 0.0  ;;  %v3931_v2 = vadd.f32 %v2842_v21, %v5401_v4  ;;  %v3899_v57 = vpop.f32.mrb[14].mxu0 }
 0x1ef   : > { %3074 = vst [vmem:[%s5428_s26 + $0x58] sm:$0xff] %v3042_v54  ;;  %v2974_v16 = vmul.f32 %v3930_v25, %v5411_v46  ;;  %v3932_v62 = vadd.f32 %v3899_v57, %v5403_v59  ;;  %v2845_v17 = vpop.f32.mrb[15].mxu0 }
 0x1f0   : > { %3072 = vst [vmem:[%s5428_s26 + $0x48] sm:$0xff] %v3040_v45  ;;  %v2972_v12 = vmul.f32 %v3931_v2, %v5411_v46  ;;  %v3933_v19 = vadd.f32 %v2845_v17, %v5405_v13 }
 0x1f1   : > { %v3013_v60 = vadd.f32 %v5416_v53, %v2974_v16  ;;  %v2975_v27 = vmul.f32 %v3932_v62, %v5411_v46 }
 0x1f2   : > { %v3011_v4 = vadd.f32 %v5416_v53, %v2972_v12  ;;  %v2973_v43 = vmul.f32 %v3933_v19, %v5411_v46 }
 0x1f3   : > { %v3045_v55 = vmax.f32 %v3013_v60, 0.0  ;;  %v3014_v59 = vadd.f32 %v5416_v53, %v2975_v27 }
 0x1f4   : > { %v3043_v0 = vmax.f32 %v3011_v4, 0.0  ;;  %v3012_v40 = vadd.f32 %v5416_v53, %v2973_v43  ;;  %v3902_v24 = vpop.f32.mrb[16].mxu0 }
 0x1f5   : > { %3077 = vst [vmem:[%s5428_s26 + $0x70] sm:$0xff] %v3045_v55  ;;  %v3046_v23 = vmax.f32 %v3014_v59, 0.0  ;;  %v2858_v13 = vpop.f32.mrb[17].mxu0 }
 0x1f6   : > { %3075 = vst [vmem:[%s5428_s26 + $0x60] sm:$0xff] %v3043_v0  ;;  %v3044_v37 = vmax.f32 %v3012_v40, 0.0  ;;  %v3903_v33 = vpop.f32.mrb[18].mxu0 }
 0x1f7   : > { %3078 = vst [vmem:[%s5428_s26 + $0x78] sm:$0xff] %v3046_v23  ;;  %v2861_v34 = vpop.f32.mrb[19].mxu0 }
 0x1f8   : > { %3076 = vst [vmem:[%s5428_s26 + $0x68] sm:$0xff] %v3044_v37  ;;  %v3766_v47 = vpop.f32.mrb[16].mxu1 }
 0x1f9   : > { %v3934_v22 = vadd.f32 %v3902_v24, %v3766_v47  ;;  %v2009_v38 = vpop.f32.mrb[17].mxu1 }
 0x1fa   : > { %v3935_v20 = vadd.f32 %v2858_v13, %v2009_v38  ;;  %v3767_v58 = vpop.f32.mrb[18].mxu1 }
 0x1fb   : > { %v2978_v29 = vmul.f32 %v3934_v22, %v5411_v46  ;;  %v3936_v8 = vadd.f32 %v3903_v33, %v3767_v58  ;;  %v2012_v28 = vpop.f32.mrb[19].mxu1 }
 0x1fc   : > { %v3906_v3 = vpop.f32.mrb[20].mxu0  ;;  %v2976_v18 = vmul.f32 %v3935_v20, %v5411_v46  ;;  %v3937_v30 = vadd.f32 %v2861_v34, %v2012_v28 }
 0x1fd   : > { %v2874_v63 = vpop.f32.mrb[21].mxu0  ;;  %v3017_v5 = vadd.f32 %v5416_v53, %v2978_v29  ;;  %v2979_v56 = vmul.f32 %v3936_v8, %v5411_v46 }
 0x1fe   : > { %v3907_v44 = vpop.f32.mrb[22].mxu0  ;;  %v3015_v49 = vadd.f32 %v5416_v53, %v2976_v18  ;;  %v2977_v35 = vmul.f32 %v3937_v30, %v5411_v46 }
 0x1ff   : > { %v2877_v9 = vpop.f32.mrb[23].mxu0  ;;  %v3049_v10 = vmax.f32 %v3017_v5, 0.0  ;;  %v3018_v41 = vadd.f32 %v5416_v53, %v2979_v56 }
 0x200   : > { %v3047_v15 = vmax.f32 %v3015_v49, 0.0  ;;  %v3016_v39 = vadd.f32 %v5416_v53, %v2977_v35  ;;  %v3770_v6 = vpop.f32.mrb[20].mxu1 }
 0x201   : > { %3081 = vst [vmem:[%s5428_s26 + $0x90] sm:$0xff] %v3049_v10  ;;  %v3050_v50 = vmax.f32 %v3018_v41, 0.0  ;;  %v3938_v7 = vadd.f32 %v3906_v3, %v3770_v6  ;;  %v2025_v1 = vpop.f32.mrb[21].mxu1 }
 0x202   : > { %3079 = vst [vmem:[%s5428_s26 + $0x80] sm:$0xff] %v3047_v15  ;;  %v3048_v42 = vmax.f32 %v3016_v39, 0.0  ;;  %v3939_v48 = vadd.f32 %v2874_v63, %v2025_v1  ;;  %v3771_v26 = vpop.f32.mrb[22].mxu1 }
 0x203   : > { %3082 = vst [vmem:[%s5428_s26 + $0x98] sm:$0xff] %v3050_v50  ;;  %v2982_v31 = vmul.f32 %v3938_v7, %v5411_v46  ;;  %v3940_v51 = vadd.f32 %v3907_v44, %v3771_v26  ;;  %v2028_v32 = vpop.f32.mrb[23].mxu1 }
 0x204   : > { %v3910_v52 = vpop.f32.mrb[24].mxu0  ;;  %3080 = vst [vmem:[%s5428_s26 + $0x88] sm:$0xff] %v3048_v42  ;;  %v2980_v11 = vmul.f32 %v3939_v48, %v5411_v46  ;;  %v3941_v36 = vadd.f32 %v2877_v9, %v2028_v32 }
 0x205   : > { %v2890_v14 = vpop.f32.mrb[25].mxu0  ;;  %v3021_v61 = vadd.f32 %v5416_v53, %v2982_v31  ;;  %v2983_v54 = vmul.f32 %v3940_v51, %v5411_v46 }
 0x206   : > { %v3911_v25 = vpop.f32.mrb[26].mxu0  ;;  %v3019_v21 = vadd.f32 %v5416_v53, %v2980_v11  ;;  %v2981_v45 = vmul.f32 %v3941_v36, %v5411_v46 }
 0x207   : > { %v2893_v2 = vpop.f32.mrb[27].mxu0  ;;  %v3053_v57 = vmax.f32 %v3021_v61, 0.0  ;;  %v3022_v16 = vadd.f32 %v5416_v53, %v2983_v54 }
 0x208   : > { %v3051_v62 = vmax.f32 %v3019_v21, 0.0  ;;  %v3020_v17 = vadd.f32 %v5416_v53, %v2981_v45  ;;  %v3774_v12 = vpop.f32.mrb[24].mxu1 }
 0x209   : > { %3085 = vst [vmem:[%s5428_s26 + $0xb0] sm:$0xff] %v3053_v57  ;;  %v3054_v19 = vmax.f32 %v3022_v16, 0.0  ;;  %v3942_v60 = vadd.f32 %v3910_v52, %v3774_v12  ;;  %v2041_v27 = vpop.f32.mrb[25].mxu1 }
 0x20a   : > { %3083 = vst [vmem:[%s5428_s26 + $0xa0] sm:$0xff] %v3051_v62  ;;  %v3052_v4 = vmax.f32 %v3020_v17, 0.0  ;;  %v3943_v43 = vadd.f32 %v2890_v14, %v2041_v27  ;;  %v3775_v55 = vpop.f32.mrb[26].mxu1 }
 0x20b   : > { %3086 = vst [vmem:[%s5428_s26 + $0xb8] sm:$0xff] %v3054_v19  ;;  %v2986_v59 = vmul.f32 %v3942_v60, %v5411_v46  ;;  %v3944_v0 = vadd.f32 %v3911_v25, %v3775_v55  ;;  %v2044_v40 = vpop.f32.mrb[27].mxu1 }
 0x20c   : > { %v3914_v24 = vpop.f32.mrb[28].mxu0  ;;  %3084 = vst [vmem:[%s5428_s26 + $0xa8] sm:$0xff] %v3052_v4  ;;  %v2984_v23 = vmul.f32 %v3943_v43, %v5411_v46  ;;  %v3945_v13 = vadd.f32 %v2893_v2, %v2044_v40 }
 0x20d   : > { %v2906_v37 = vpop.f32.mrb[29].mxu0  ;;  %v3025_v33 = vadd.f32 %v5416_v53, %v2986_v59  ;;  %v2987_v34 = vmul.f32 %v3944_v0, %v5411_v46 }
 0x20e   : > { %v3915_v47 = vpop.f32.mrb[30].mxu0  ;;  %v3023_v22 = vadd.f32 %v5416_v53, %v2984_v23  ;;  %v2985_v38 = vmul.f32 %v3945_v13, %v5411_v46 }
 0x20f   : > { %v2909_v20 = vpop.f32.mrb[31].mxu0  ;;  %v3057_v58 = vmax.f32 %v3025_v33, 0.0  ;;  %v3026_v29 = vadd.f32 %v5416_v53, %v2987_v34 }
 0x210   : > { %v3055_v8 = vmax.f32 %v3023_v22, 0.0  ;;  %v3024_v28 = vadd.f32 %v5416_v53, %v2985_v38  ;;  %v3778_v3 = vpop.f32.mrb[28].mxu1 }
 0x211   : > { %3089 = vst [vmem:[%s5428_s26 + $0xd0] sm:$0xff] %v3057_v58  ;;  %v3058_v18 = vmax.f32 %v3026_v29, 0.0  ;;  %v3946_v30 = vadd.f32 %v3914_v24, %v3778_v3  ;;  %v2057_v63 = vpop.f32.mrb[29].mxu1 }
 0x212   : > { %3087 = vst [vmem:[%s5428_s26 + $0xc0] sm:$0xff] %v3055_v8  ;;  %v3056_v5 = vmax.f32 %v3024_v28, 0.0  ;;  %v3947_v56 = vadd.f32 %v2906_v37, %v2057_v63  ;;  %v3779_v44 = vpop.f32.mrb[30].mxu1 }
 0x213   : > { %3090 = vst [vmem:[%s5428_s26 + $0xd8] sm:$0xff] %v3058_v18  ;;  %v2990_v49 = vmul.f32 %v3946_v30, %v5411_v46  ;;  %v3948_v35 = vadd.f32 %v3915_v47, %v3779_v44  ;;  %v2060_v9 = vpop.f32.mrb[31].mxu1 }
 0x214   : > { %3088 = vst [vmem:[%s5428_s26 + $0xc8] sm:$0xff] %v3056_v5  ;;  %v2988_v10 = vmul.f32 %v3947_v56, %v5411_v46  ;;  %v3949_v41 = vadd.f32 %v2909_v20, %v2060_v9 }
 0x215   : > { %v3029_v15 = vadd.f32 %v5416_v53, %v2990_v49  ;;  %v2991_v39 = vmul.f32 %v3948_v35, %v5411_v46 }
 0x216   : > { %v3027_v6 = vadd.f32 %v5416_v53, %v2988_v10  ;;  %v2989_v50 = vmul.f32 %v3949_v41, %v5411_v46 }
 0x217   : > { %v3061_v7 = vmax.f32 %v3029_v15, 0.0  ;;  %v3030_v1 = vadd.f32 %v5416_v53, %v2991_v39 }
 0x218   : > { %v3059_v42 = vmax.f32 %v3027_v6, 0.0  ;;  %v3028_v48 = vadd.f32 %v5416_v53, %v2989_v50 }
 0x219   : > { %3093 = vst [vmem:[%s5428_s26 + $0xf0] sm:$0xff] %v3061_v7  ;;  %v3062_v26 = vmax.f32 %v3030_v1, 0.0 }
 0x21a   : > { %3091 = vst [vmem:[%s5428_s26 + $0xe0] sm:$0xff] %v3059_v42  ;;  %v3060_v46 = vmax.f32 %v3028_v48, 0.0 }
 0x21b   : > { %3094 = vst [vmem:[%s5428_s26 + $0xf8] sm:$0xff] %v3062_v26 }
 0x21c   : > { %3092 = vst [vmem:[%s5428_s26 + $0xe8] sm:$0xff] %v3060_v46 }
 0x21d   : > { %4256 = shalt.err (!%p4253_p5)
}
 0x21e   : > { %s4257_s16 = scalar_lea.hbm %s5526_s11, 4096  ;;  %s4261_s19 = scalar_lea.hbm %s5587_s6, 8192 }
 0x21f   : > { %p4258_p6 = scmp.ne.s32.totalorder %s5526_s11, %s4257_s16  ;;  %p4262_p10 = scmp.lt.u32.totalorder %s5526_s11, %s5587_s6 }
 0x220   : > { %p4263_p11 = scmp.lt.u32.totalorder %s4261_s19, %s4257_s16  ;;  %p4265_p13 = scmp.lt.u32.totalorder %s4257_s16, %s5526_s11 }
 0x221   : > { %p4259_p7 = pnand %p4258_p6, %p4403_p4 }
 0x222   : > { %p4264_p12 = por %p4263_p11, %p4262_p10 }
 0x223   : > { %p4260_p9 = pneg %p4259_p7 }
 0x224   : > { %p4266_p0 = por %p4265_p13, %p4264_p12 }
 0x226   : > { %p4267_p1 = pnand %p4266_p0, %p4260_p9 }
 0x228   : > { %4270 = shalt.err (!%p4267_p1)
}
 0x229   : > { %s4326_s26 = smov 128   ;;  %s4327_s28 = smov 8  }
 0x22a   : > { %4184 = dma.vmem_to_hbm [thread:$0]  (%p4403_p4), %s5528_s30, 4096, %s5526_s11, %s5535_s2, %s4326_s26, %s4326_s26, %s4327_s28  }
 0x22b PF: > { %p4190_p2 = scmp.ge.s32.totalorder %s4321_s24, 2  ;;  %s3128_s9 = sand.u32 1, %s4301_s21  }
 0x22c   : > { %s3129_s10 = scalar_lea.sflag [#allocation3], %s3128_s9 }
 0x22d   : > { %p4187_p3 = pnand %p4190_p2, %p4410_p8 }
 0x22f   : > { %4296 = dma.done.wait (!%p4187_p3), %s3129_s10, 4096  }
 0x230   : > { %4298 = vsyncadd (!%p4187_p3), %s3129_s10, 4294963200  ;;  %s19_s24 = sadd.s32 1, %s4321_s24   ;;  %s5710_s21 = smov %s4305_s1 }
 0x231   : > { %p16_p5 = scmp.ge.s32.totalorder %s19_s24, 4   ;;  %s5711_s1 = smov %s4309_s22 }
 0x232   : > { %s5712_s22 = smov %s4416_s8  ;;  %s5713_s2 = smov %s4317_s23 }
 0x233   : > { %s5714_s23 = smov %s5716_s27  ;;  %18 = sbr.rel (!%p16_p5) target bundleno = 4 (0x4), region = 102 }
 0x23a   :  { %3134 = vsyncpa [#allocation3], 1 }
 0x23b   :  { %3136 = vsyncpa [#allocation3 + $0x1], 1 }

</bundles_post_ra>
